<compile_context>
chip_gen: v7x
topology: tpu7x:2x2x1
jax: 0.10.0
libtpu: 0.0.40
codegen_flags: <defaults>
</compile_context>

<pallas_src>
import jax
import jax.numpy as jnp
from jax.experimental import pallas as pl
from jax.experimental.pallas import tpu as pltpu

F32 = jnp.float32
BF16 = jnp.bfloat16


def _round_up(v, m):
    return ((v + m - 1) // m) * m


# ---------------------------------------------------------------------------
# Fused DSAB1 kernel
# ---------------------------------------------------------------------------
def _make_dsab1_kernel(C, Cp, H, W, Bblk):
    Wc = W + 2                                   # padded row stride
    L = (H - 1) * Wc + W                         # flat span holding all true pixels (per image)
    Lw = _round_up(L, 128)                       # lane-padded compute span (lane-dense I/O)
    A0 = 128                                     # lane offset of pixel (0,0) (aligned)
    halo = Wc + 1                                # max |tap shift|
    NcX = (A0 - halo) + max((H + 2) * Wc, 2 * halo + Lw)   # per-image x-canvas length
    Ncan = _round_up(A0 + Lw + halo, 128)        # per-image o3-canvas length
    NL = Bblk * Lw
    HW = float(H * W)
    C2p = 2 * Cp
    shifts = [(dy - 1) * Wc + (dx - 1) for dy in range(3) for dx in range(3)]

    def kernel(x_ref, mask_ref, w3_ref, b3_ref, w5_ref, b5_ref,
               wu_ref, bu_ref, wl_ref, bl_ref, wf_ref, bf_ref,
               w1a_ref, w1b_ref, b1_ref, alpha_ref,
               out_ref, slab_ref, canvas_ref):
        mask = mask_ref[...]                                         # (1, NL) f32

        def prelu(v, a):
            return jnp.where(v >= 0, v, a * v)

        # ---- conv_3: stage 9 shifted taps once, then ONE fused bf16 MXU matmul -------
        for bi in range(Bblk):
            lo = bi * Lw
            for k, sh in enumerate(shifts):
                s = A0 + sh
                slab_ref[k * Cp:(k + 1) * Cp, lo:lo + Lw] = (
                    x_ref[bi, :, s:s + Lw].astype(BF16))
        o3 = jnp.dot(w3_ref[...], slab_ref[...],
                     preferred_element_type=F32) + b3_ref[...]
        o3m = prelu(o3, alpha_ref[0]) * mask                         # (Cp, NL), 0 off-image

        # ---- o3 canvas for conv_5: aligned interior store + tiny halo strip re-zero --
        zhalo = jnp.zeros((Cp, halo), BF16)
        for bi in range(Bblk):
            base = bi * Ncan + A0
            canvas_ref[:, base - halo:base] = zhalo
            canvas_ref[:, base:base + Lw] = o3m[:, bi * Lw:(bi + 1) * Lw].astype(BF16)
            canvas_ref[:, base + Lw:base + Lw + halo] = zhalo

        # ---- conv_5: same stacked-tap trick reading the o3 canvas --------------------
        for bi in range(Bblk):
            lo = bi * Lw
            base = bi * Ncan + A0
            for k, sh in enumerate(shifts):
                s = base + sh
                slab_ref[k * Cp:(k + 1) * Cp, lo:lo + Lw] = canvas_ref[:, s:s + Lw]
        o5 = jnp.dot(w5_ref[...], slab_ref[...],
                     preferred_element_type=F32) + b5_ref[...]
        o5m = prelu(o5, alpha_ref[1]) * mask

        # ---- NCA stats (per image, one-pass biased std == stdv()), batched columns ---
        m_cols, s_cols = [], []
        for bi in range(Bblk):
            s3 = o3m[:, bi * Lw:(bi + 1) * Lw]
            s5 = o5m[:, bi * Lw:(bi + 1) * Lw]
            m3 = jnp.sum(s3, axis=1, keepdims=True) / HW
            m5 = jnp.sum(s5, axis=1, keepdims=True) / HW
            v3 = jnp.maximum(jnp.sum(s3 * s3, axis=1, keepdims=True) / HW - m3 * m3, 0.0)
            v5 = jnp.maximum(jnp.sum(s5 * s5, axis=1, keepdims=True) / HW - m5 * m5, 0.0)
            m_cols.append(jnp.concatenate([m3, m5], axis=0))          # (2Cp, 1)
            s_cols.append(jnp.concatenate([jnp.sqrt(v3), jnp.sqrt(v5)], axis=0))
        mean_mat = m_cols[0] if Bblk == 1 else jnp.concatenate(m_cols, axis=1)
        std_mat = s_cols[0] if Bblk == 1 else jnp.concatenate(s_cols, axis=1)

        # ---- NCA MLP + sigmoid gate: 3 small dots for the whole image block ----------
        upper = jnp.maximum(
            jnp.dot(wu_ref[...], mean_mat, preferred_element_type=F32) + bu_ref[...], 0.0)
        lower = jnp.maximum(
            jnp.dot(wl_ref[...], std_mat, preferred_element_type=F32) + bl_ref[...], 0.0)
        gate = jax.nn.sigmoid(
            jnp.dot(wf_ref[...], upper + lower, preferred_element_type=F32) + bf_ref[...])
        # gate: (2Cp, Bblk); padded rows are 0.5 but multiply all-zero padded channels.

        # ---- gate * features, conv_1 (1x1), residual; lane-aligned halo-free store ---
        for bi in range(Bblk):
            lo = bi * Lw
            g3 = o3m[:, lo:lo + Lw] * gate[0:Cp, bi:bi + 1]
            g5 = o5m[:, lo:lo + Lw] * gate[Cp:C2p, bi:bi + 1]
            y = (jnp.dot(w1a_ref[...], g3, preferred_element_type=F32)
                 + jnp.dot(w1b_ref[...], g5, preferred_element_type=F32)
                 + b1_ref[...]
                 + x_ref[bi, :, A0:A0 + Lw])
            out_ref[bi] = y

    dims = dict(Wc=Wc, L=L, Lw=Lw, A0=A0, halo=halo, NcX=NcX, Ncan=Ncan, NL=NL)
    return kernel, dims


def _pick_block_b(B):
    # Amortize per-step pipeline overhead by folding images per step, but keep the grid
    # length >= 2 whenever B >= 2 so both v7x TensorCores stay busy (v5e/v6e: 1 TC).
    target = max(1, min(8, B // 2))
    for bb in range(target, 0, -1):
        if B % bb == 0:
            return bb
    return 1


# ---------------------------------------------------------------------------
# Wrapper: NCHW in / NCHW out, PyTorch-layout parameters
# ---------------------------------------------------------------------------
def dsab1_forward(x, params, block_b=None):
    """Fused DSAB1 forward. x: (B, C, H, W) float32, params in PyTorch Conv2d layouts."""
    B, C, H, W = x.shape
    C2 = 2 * C
    Cr = params["nca_up_w"].shape[0]
    Cp = _round_up(C, 16)                        # channel pad -> full bf16 sublane tiles
    Bblk = _pick_block_b(B) if block_b is None else block_b
    assert B % Bblk == 0

    kernel, d = _make_dsab1_kernel(C, Cp, H, W, Bblk)
    Wc, L, Lw = d["Wc"], d["L"], d["Lw"]
    A0, halo, NcX, Ncan, NL = d["A0"], d["halo"], d["NcX"], d["Ncan"], d["NL"]

    # input canvas: pad channels to Cp, spatial zero-pad by 1, flatten spatial onto lanes,
    # and place pixel (0,0) at lane A0=128 (aligned residual read / canvas stores).
    xpad = jnp.pad(x.astype(F32), ((0, 0), (0, Cp - C), (1, 1), (1, 1)))
    xflat = xpad.reshape(B, Cp, (H + 2) * Wc)
    lead = A0 - halo
    xcan = jnp.pad(xflat, ((0, 0), (0, 0), (lead, NcX - lead - (H + 2) * Wc)))

    # valid-pixel mask over the lane-padded span (tiled over the image block)
    n = jnp.arange(Lw)
    mask1 = ((n < L) & ((n % Wc) < W)).astype(F32).reshape(1, Lw)
    mask = jnp.tile(mask1, (1, Bblk))

    # ---- weight packing (tiny, runs under jit) ------------------------------------
    def pack3x3(w):            # (C,C,3,3) -> (Cp, 9*Cp) bf16, 9 taps stacked along K
        w9 = jnp.transpose(w, (2, 3, 0, 1)).reshape(9, C, C)
        w9 = jnp.pad(w9, ((0, 0), (0, Cp - C), (0, Cp - C)))
        return jnp.transpose(w9, (1, 0, 2)).reshape(Cp, 9 * Cp).astype(BF16)

    def pad_rows(v, rows):
        return jnp.pad(v, ((0, rows - v.shape[0]), (0, 0)))

    w3 = pack3x3(params["conv3_w"]); b3 = pad_rows(params["conv3_b"].reshape(C, 1), Cp)
    w5 = pack3x3(params["conv5_w"]); b5 = pad_rows(params["conv5_b"].reshape(C, 1), Cp)

    def pack_in_2c(w):         # (Cr, 2C[,1,1]) -> (Cr, 2Cp): o3-half cols, then o5-half cols
        w = w.reshape(w.shape[0], C2)
        return jnp.concatenate([jnp.pad(w[:, :C], ((0, 0), (0, Cp - C))),
                                jnp.pad(w[:, C:], ((0, 0), (0, Cp - C)))], axis=1)

    wu = pack_in_2c(params["nca_up_w"]);  bu = params["nca_up_b"].reshape(Cr, 1)
    wl = pack_in_2c(params["nca_low_w"]); bl = params["nca_low_b"].reshape(Cr, 1)

    wf2 = params["nca_fuse_w"].reshape(C2, Cr)
    wf = jnp.concatenate([pad_rows(wf2[:C], Cp), pad_rows(wf2[C:], Cp)], axis=0)
    bf2 = params["nca_fuse_b"].reshape(C2, 1)
    bf = jnp.concatenate([pad_rows(bf2[:C], Cp), pad_rows(bf2[C:], Cp)], axis=0)

    w12 = params["conv1_w"].reshape(C, C2)
    w1a = jnp.pad(w12[:, :C], ((0, Cp - C), (0, Cp - C)))
    w1b = jnp.pad(w12[:, C:], ((0, Cp - C), (0, Cp - C)))
    b1 = pad_rows(params["conv1_b"].reshape(C, 1), Cp)

    alphas = jnp.stack([params["prelu3"], params["prelu5"]]).astype(F32)

    full2 = lambda b: (0, 0)

    out = pl.pallas_call(
        kernel,
        out_shape=jax.ShapeDtypeStruct((B, Cp, Lw), F32),
        grid=(B // Bblk,),
        in_specs=[
            pl.BlockSpec((Bblk, Cp, NcX), lambda b: (b, 0, 0)),    # x canvases (per block)
            pl.BlockSpec((1, NL), full2),                          # valid-pixel mask
            pl.BlockSpec((Cp, 9 * Cp), full2),                     # conv_3 stacked taps (bf16)
            pl.BlockSpec((Cp, 1), full2),                          # conv_3 bias
            pl.BlockSpec((Cp, 9 * Cp), full2),                     # conv_5 stacked taps (bf16)
            pl.BlockSpec((Cp, 1), full2),                          # conv_5 bias
            pl.BlockSpec((Cr, 2 * Cp), full2),                     # NCA upper 1x1 weight
            pl.BlockSpec((Cr, 1), full2),                          # NCA upper 1x1 bias
            pl.BlockSpec((Cr, 2 * Cp), full2),                     # NCA lower 1x1 weight
            pl.BlockSpec((Cr, 1), full2),                          # NCA lower 1x1 bias
            pl.BlockSpec((2 * Cp, Cr), full2),                     # NCA fuse 1x1 weight
            pl.BlockSpec((2 * Cp, 1), full2),                      # NCA fuse 1x1 bias
            pl.BlockSpec((Cp, Cp), full2),                         # conv_1 weight (o3 half)
            pl.BlockSpec((Cp, Cp), full2),                         # conv_1 weight (o5 half)
            pl.BlockSpec((Cp, 1), full2),                          # conv_1 bias
            pl.BlockSpec(memory_space=pltpu.MemorySpace.SMEM),     # PReLU alphas (scalars)
        ],
        out_specs=pl.BlockSpec((Bblk, Cp, Lw), lambda b: (b, 0, 0)),
        scratch_shapes=[
            pltpu.VMEM((9 * Cp, NL), BF16),        # stacked 9-tap slab (shared by both convs)
            pltpu.VMEM((Cp, Bblk * Ncan), BF16),   # zero-padded o3 canvas for conv_5
        ],
        compiler_params=pltpu.CompilerParams(
            dimension_semantics=("parallel",)),
    )(xcan, mask, w3, b3, w5, b5, wu, bu, wl, bl, wf, bf, w1a, w1b, b1, alphas)

    # interior-only flat slab -> NCHW (drop channel pad and inter-row halo columns)
    y = out[:, :C, :]
    pad_tail = max(0, H * Wc - Lw)
    if pad_tail:
        y = jnp.pad(y, ((0, 0), (0, 0), (0, pad_tail)))
    return y[:, :, :H * Wc].reshape(B, C, H, Wc)[:, :, :, :W]


# ---------------------------------------------------------------------------
# Deterministic parameters (PyTorch Conv2d layouts) and a plain-JAX reference
# ---------------------------------------------------------------------------
def init_params(key, n_feats):
    C = n_feats
    C2 = 2 * C
    Cr = C2 // 12                   # NCA(n_feats * 2, reduction=12)
    ks = iter(jax.random.split(key, 16))

    def w(shape, scale=0.1):
        return jax.random.normal(next(ks), shape, F32) * scale

    return dict(
        conv3_w=w((C, C, 3, 3)), conv3_b=w((C,), 0.01), prelu3=jnp.asarray(0.05, F32),
        conv5_w=w((C, C, 3, 3)), conv5_b=w((C,), 0.01), prelu5=jnp.asarray(0.05, F32),
        nca_up_w=w((Cr, C2, 1, 1)), nca_up_b=w((Cr,), 0.01),
        nca_low_w=w((Cr, C2, 1, 1)), nca_low_b=w((Cr,), 0.01),
        nca_fuse_w=w((C2, Cr, 1, 1)), nca_fuse_b=w((C2,), 0.01),
        conv1_w=w((C, C2, 1, 1)), conv1_b=w((C,), 0.01),
    )


def dsab1_reference(x, params):
    """Plain-JAX mirror of the PyTorch DSAB1 forward (for a sanity check)."""
    dn = ("NCHW", "OIHW", "NCHW")

    def conv(v, w, b, pad):
        y = jax.lax.conv_general_dilated(
            v, w, window_strides=(1, 1), padding=[(pad, pad), (pad, pad)],
            dimension_numbers=dn, precision=jax.lax.Precision.HIGHEST)
        return y + b.reshape(1, -1, 1, 1)

    def prelu(v, a):
        return jnp.where(v >= 0, v, a * v)

    o3 = prelu(conv(x, params["conv3_w"], params["conv3_b"], 1), params["prelu3"])
    o5 = prelu(conv(o3, params["conv5_w"], params["conv5_b"], 1), params["prelu5"])
    o35 = jnp.concatenate([o3, o5], axis=1)
    mean = jnp.mean(o35, axis=(2, 3), keepdims=True)
    var = jnp.mean((o35 - mean) ** 2, axis=(2, 3), keepdims=True)   # biased, like stdv()
    std = jnp.sqrt(var)
    upper = jax.nn.relu(conv(mean, params["nca_up_w"], params["nca_up_b"], 0))
    lower = jax.nn.relu(conv(std, params["nca_low_w"], params["nca_low_b"], 0))
    gate = jax.nn.sigmoid(conv(upper + lower, params["nca_fuse_w"], params["nca_fuse_b"], 0))
    return conv(gate * o35, params["conv1_w"], params["conv1_b"], 0) + x


if __name__ == "__main__":
    n_feats = 12                    # 2*n_feats = 24 channels, NCA reduction 12 -> 2 hidden
    B, H, W = 2, 16, 16
    kx, kp = jax.random.split(jax.random.PRNGKey(0))
    x = jax.random.normal(kx, (B, n_feats, H, W), F32)    # NCHW, like the PyTorch module
    params = init_params(kp, n_feats)

    out = jax.block_until_ready(jax.jit(dsab1_forward)(x, params))
    assert out.shape == x.shape and out.dtype == F32

    ref = dsab1_reference(x, params)
    err = float(jnp.max(jnp.abs(out - ref)))
    assert err < 5e-2, f"kernel/reference mismatch: max abs err = {err}"
    print("KERNEL_OK")
</pallas_src>

<mosaic_0001>
module attributes {stable_mosaic.version = 11 : i64} {
  func.func @kernel(%arg0: i32, %arg1: memref<1x16x531xf32, #tpu.memory_space<vmem>>, %arg2: memref<1x384xf32, #tpu.memory_space<vmem>>, %arg3: memref<16x144xbf16, #tpu.memory_space<vmem>>, %arg4: memref<16x1xf32, #tpu.memory_space<vmem>>, %arg5: memref<16x144xbf16, #tpu.memory_space<vmem>>, %arg6: memref<16x1xf32, #tpu.memory_space<vmem>>, %arg7: memref<2x32xf32, #tpu.memory_space<vmem>>, %arg8: memref<2x1xf32, #tpu.memory_space<vmem>>, %arg9: memref<2x32xf32, #tpu.memory_space<vmem>>, %arg10: memref<2x1xf32, #tpu.memory_space<vmem>>, %arg11: memref<32x2xf32, #tpu.memory_space<vmem>>, %arg12: memref<32x1xf32, #tpu.memory_space<vmem>>, %arg13: memref<16x16xf32, #tpu.memory_space<vmem>>, %arg14: memref<16x16xf32, #tpu.memory_space<vmem>>, %arg15: memref<16x1xf32, #tpu.memory_space<vmem>>, %arg16: memref<2xf32, #tpu.memory_space<smem>>, %arg17: memref<1x16x384xf32, #tpu.memory_space<vmem>>, %arg18: memref<144x384xbf16, #tpu.memory_space<vmem>>, %arg19: memref<16x640xbf16, #tpu.memory_space<vmem>>) attributes {dimension_semantics = [#tpu.dimension_semantics<parallel>], iteration_bounds = array<i64: 2>, scalar_prefetch = 0 : i64, scratch_operands = 2 : i64, tpu.core_type = #tpu.core_type<tc>, window_params = [{transform_indices = @transform_0, window_bounds = array<i64: 1, 16, 531>}, {pipeline_mode = #tpu.pipeline_mode<synchronous>, transform_indices = @transform_1, window_bounds = array<i64: 1, 384>}, {pipeline_mode = #tpu.pipeline_mode<synchronous>, transform_indices = @transform_2, window_bounds = array<i64: 16, 144>}, {pipeline_mode = #tpu.pipeline_mode<synchronous>, transform_indices = @transform_3, window_bounds = array<i64: 16, 1>}, {pipeline_mode = #tpu.pipeline_mode<synchronous>, transform_indices = @transform_4, window_bounds = array<i64: 16, 144>}, {pipeline_mode = #tpu.pipeline_mode<synchronous>, transform_indices = @transform_5, window_bounds = array<i64: 16, 1>}, {pipeline_mode = #tpu.pipeline_mode<synchronous>, transform_indices = @transform_6, window_bounds = array<i64: 2, 32>}, {pipeline_mode = #tpu.pipeline_mode<synchronous>, transform_indices = @transform_7, window_bounds = array<i64: 2, 1>}, {pipeline_mode = #tpu.pipeline_mode<synchronous>, transform_indices = @transform_8, window_bounds = array<i64: 2, 32>}, {pipeline_mode = #tpu.pipeline_mode<synchronous>, transform_indices = @transform_9, window_bounds = array<i64: 2, 1>}, {pipeline_mode = #tpu.pipeline_mode<synchronous>, transform_indices = @transform_10, window_bounds = array<i64: 32, 2>}, {pipeline_mode = #tpu.pipeline_mode<synchronous>, transform_indices = @transform_11, window_bounds = array<i64: 32, 1>}, {pipeline_mode = #tpu.pipeline_mode<synchronous>, transform_indices = @transform_12, window_bounds = array<i64: 16, 16>}, {pipeline_mode = #tpu.pipeline_mode<synchronous>, transform_indices = @transform_13, window_bounds = array<i64: 16, 16>}, {pipeline_mode = #tpu.pipeline_mode<synchronous>, transform_indices = @transform_14, window_bounds = array<i64: 16, 1>}, {transform_indices = @transform_15, window_bounds = array<i64: 2>}, {transform_indices = @transform_16, window_bounds = array<i64: 1, 16, 384>}]} {
    %c0 = arith.constant 0 : index
    %c0_0 = arith.constant 0 : index
    %0 = vector.load %arg2[%c0, %c0_0] : memref<1x384xf32, #tpu.memory_space<vmem>>, vector<1x384xf32>
    %c0_1 = arith.constant 0 : index
    %c0_2 = arith.constant 0 : index
    %c109 = arith.constant 109 : index
    %1 = vector.load %arg1[%c0_1, %c0_2, %c109] : memref<1x16x531xf32, #tpu.memory_space<vmem>>, vector<1x16x384xf32>
    %2 = vector.shape_cast %1 : vector<1x16x384xf32> to vector<16x384xf32>
    %3 = arith.truncf %2 : vector<16x384xf32> to vector<16x384xbf16>
    %c0_3 = arith.constant 0 : index
    %c0_4 = arith.constant 0 : index
    %4 = vector.load %arg18[%c0_3, %c0_4] : memref<144x384xbf16, #tpu.memory_space<vmem>>, vector<16x384xbf16>
    tpu.vector_store %arg18[%c0_3, %c0_4], %3 {strides = array<i32>} : memref<144x384xbf16, #tpu.memory_space<vmem>>, vector<16x384xbf16>,
    %c0_5 = arith.constant 0 : index
    %c0_6 = arith.constant 0 : index
    %c110 = arith.constant 110 : index
    %5 = vector.load %arg1[%c0_5, %c0_6, %c110] : memref<1x16x531xf32, #tpu.memory_space<vmem>>, vector<1x16x384xf32>
    %6 = vector.shape_cast %5 : vector<1x16x384xf32> to vector<16x384xf32>
    %7 = arith.truncf %6 : vector<16x384xf32> to vector<16x384xbf16>
    %c16 = arith.constant 16 : index
    %c0_7 = arith.constant 0 : index
    %8 = vector.load %arg18[%c16, %c0_7] : memref<144x384xbf16, #tpu.memory_space<vmem>>, vector<16x384xbf16>
    tpu.vector_store %arg18[%c16, %c0_7], %7 {strides = array<i32>} : memref<144x384xbf16, #tpu.memory_space<vmem>>, vector<16x384xbf16>,
    %c0_8 = arith.constant 0 : index
    %c0_9 = arith.constant 0 : index
    %c111 = arith.constant 111 : index
    %9 = vector.load %arg1[%c0_8, %c0_9, %c111] : memref<1x16x531xf32, #tpu.memory_space<vmem>>, vector<1x16x384xf32>
    %10 = vector.shape_cast %9 : vector<1x16x384xf32> to vector<16x384xf32>
    %11 = arith.truncf %10 : vector<16x384xf32> to vector<16x384xbf16>
    %c32 = arith.constant 32 : index
    %c0_10 = arith.constant 0 : index
    %12 = vector.load %arg18[%c32, %c0_10] : memref<144x384xbf16, #tpu.memory_space<vmem>>, vector<16x384xbf16>
    tpu.vector_store %arg18[%c32, %c0_10], %11 {strides = array<i32>} : memref<144x384xbf16, #tpu.memory_space<vmem>>, vector<16x384xbf16>,
    %c0_11 = arith.constant 0 : index
    %c0_12 = arith.constant 0 : index
    %c127 = arith.constant 127 : index
    %13 = vector.load %arg1[%c0_11, %c0_12, %c127] : memref<1x16x531xf32, #tpu.memory_space<vmem>>, vector<1x16x384xf32>
    %14 = vector.shape_cast %13 : vector<1x16x384xf32> to vector<16x384xf32>
    %15 = arith.truncf %14 : vector<16x384xf32> to vector<16x384xbf16>
    %c48 = arith.constant 48 : index
    %c0_13 = arith.constant 0 : index
    %16 = vector.load %arg18[%c48, %c0_13] : memref<144x384xbf16, #tpu.memory_space<vmem>>, vector<16x384xbf16>
    tpu.vector_store %arg18[%c48, %c0_13], %15 {strides = array<i32>} : memref<144x384xbf16, #tpu.memory_space<vmem>>, vector<16x384xbf16>,
    %c0_14 = arith.constant 0 : index
    %c0_15 = arith.constant 0 : index
    %c128 = arith.constant 128 : index
    %17 = vector.load %arg1[%c0_14, %c0_15, %c128] : memref<1x16x531xf32, #tpu.memory_space<vmem>>, vector<1x16x384xf32>
    %18 = vector.shape_cast %17 : vector<1x16x384xf32> to vector<16x384xf32>
    %19 = arith.truncf %18 : vector<16x384xf32> to vector<16x384xbf16>
    %c64 = arith.constant 64 : index
    %c0_16 = arith.constant 0 : index
    %20 = vector.load %arg18[%c64, %c0_16] : memref<144x384xbf16, #tpu.memory_space<vmem>>, vector<16x384xbf16>
    tpu.vector_store %arg18[%c64, %c0_16], %19 {strides = array<i32>} : memref<144x384xbf16, #tpu.memory_space<vmem>>, vector<16x384xbf16>,
    %c0_17 = arith.constant 0 : index
    %c0_18 = arith.constant 0 : index
    %c129 = arith.constant 129 : index
    %21 = vector.load %arg1[%c0_17, %c0_18, %c129] : memref<1x16x531xf32, #tpu.memory_space<vmem>>, vector<1x16x384xf32>
    %22 = vector.shape_cast %21 : vector<1x16x384xf32> to vector<16x384xf32>
    %23 = arith.truncf %22 : vector<16x384xf32> to vector<16x384xbf16>
    %c80 = arith.constant 80 : index
    %c0_19 = arith.constant 0 : index
    %24 = vector.load %arg18[%c80, %c0_19] : memref<144x384xbf16, #tpu.memory_space<vmem>>, vector<16x384xbf16>
    tpu.vector_store %arg18[%c80, %c0_19], %23 {strides = array<i32>} : memref<144x384xbf16, #tpu.memory_space<vmem>>, vector<16x384xbf16>,
    %c0_20 = arith.constant 0 : index
    %c0_21 = arith.constant 0 : index
    %c145 = arith.constant 145 : index
    %25 = vector.load %arg1[%c0_20, %c0_21, %c145] : memref<1x16x531xf32, #tpu.memory_space<vmem>>, vector<1x16x384xf32>
    %26 = vector.shape_cast %25 : vector<1x16x384xf32> to vector<16x384xf32>
    %27 = arith.truncf %26 : vector<16x384xf32> to vector<16x384xbf16>
    %c96 = arith.constant 96 : index
    %c0_22 = arith.constant 0 : index
    %28 = vector.load %arg18[%c96, %c0_22] : memref<144x384xbf16, #tpu.memory_space<vmem>>, vector<16x384xbf16>
    tpu.vector_store %arg18[%c96, %c0_22], %27 {strides = array<i32>} : memref<144x384xbf16, #tpu.memory_space<vmem>>, vector<16x384xbf16>,
    %c0_23 = arith.constant 0 : index
    %c0_24 = arith.constant 0 : index
    %c146 = arith.constant 146 : index
    %29 = vector.load %arg1[%c0_23, %c0_24, %c146] : memref<1x16x531xf32, #tpu.memory_space<vmem>>, vector<1x16x384xf32>
    %30 = vector.shape_cast %29 : vector<1x16x384xf32> to vector<16x384xf32>
    %31 = arith.truncf %30 : vector<16x384xf32> to vector<16x384xbf16>
    %c112 = arith.constant 112 : index
    %c0_25 = arith.constant 0 : index
    %32 = vector.load %arg18[%c112, %c0_25] : memref<144x384xbf16, #tpu.memory_space<vmem>>, vector<16x384xbf16>
    tpu.vector_store %arg18[%c112, %c0_25], %31 {strides = array<i32>} : memref<144x384xbf16, #tpu.memory_space<vmem>>, vector<16x384xbf16>,
    %c0_26 = arith.constant 0 : index
    %c0_27 = arith.constant 0 : index
    %c147 = arith.constant 147 : index
    %33 = vector.load %arg1[%c0_26, %c0_27, %c147] : memref<1x16x531xf32, #tpu.memory_space<vmem>>, vector<1x16x384xf32>
    %34 = vector.shape_cast %33 : vector<1x16x384xf32> to vector<16x384xf32>
    %35 = arith.truncf %34 : vector<16x384xf32> to vector<16x384xbf16>
    %c128_28 = arith.constant 128 : index
    %c0_29 = arith.constant 0 : index
    %36 = vector.load %arg18[%c128_28, %c0_29] : memref<144x384xbf16, #tpu.memory_space<vmem>>, vector<16x384xbf16>
    tpu.vector_store %arg18[%c128_28, %c0_29], %35 {strides = array<i32>} : memref<144x384xbf16, #tpu.memory_space<vmem>>, vector<16x384xbf16>,
    %c0_30 = arith.constant 0 : index
    %c0_31 = arith.constant 0 : index
    %37 = vector.load %arg3[%c0_30, %c0_31] : memref<16x144xbf16, #tpu.memory_space<vmem>>, vector<16x144xbf16>
    %c0_32 = arith.constant 0 : index
    %c0_33 = arith.constant 0 : index
    %38 = vector.load %arg18[%c0_32, %c0_33] : memref<144x384xbf16, #tpu.memory_space<vmem>>, vector<144x384xbf16>
    %cst = arith.constant dense<0.000000e+00> : vector<16x384xf32>
    %39 = tpu.matmul %37, %38, %cst {dimension_numbers = #tpu.dot_dimension_numbers<[1], [0], [0], [1], [0, 0, 1, 1], [], []>} : vector<16x144xbf16>, vector<144x384xbf16>, vector<16x384xf32> -> vector<16x384xf32>
    %c0_34 = arith.constant 0 : index
    %c0_35 = arith.constant 0 : index
    %40 = vector.load %arg4[%c0_34, %c0_35] : memref<16x1xf32, #tpu.memory_space<vmem>>, vector<16x1xf32>
    %41 = vector.broadcast %40 : vector<16x1xf32> to vector<16x384xf32>
    %42 = arith.addf %39, %41 : vector<16x384xf32>
    %c0_36 = arith.constant 0 : index
    %43 = memref.load %arg16[%c0_36] : memref<2xf32, #tpu.memory_space<smem>>
    %cst_37 = arith.constant 0.000000e+00 : f32
    %44 = vector.broadcast %cst_37 : f32 to vector<16x384xf32>
    %45 = arith.cmpf oge, %42, %44 : vector<16x384xf32>
    %46 = vector.broadcast %43 : f32 to vector<16x384xf32>
    %47 = arith.mulf %46, %42 : vector<16x384xf32>
    %48 = arith.select %45, %42, %47 : vector<16x384xi1>, vector<16x384xf32>
    %49 = vector.broadcast %0 : vector<1x384xf32> to vector<16x384xf32>
    %50 = arith.mulf %48, %49 : vector<16x384xf32>
    %cst_38 = arith.constant 0.000000e+00 : bf16
    %51 = vector.broadcast %cst_38 : bf16 to vector<16x19xbf16>
    %c0_39 = arith.constant 0 : index
    %c109_40 = arith.constant 109 : index
    %52 = vector.load %arg19[%c0_39, %c109_40] : memref<16x640xbf16, #tpu.memory_space<vmem>>, vector<16x19xbf16>
    tpu.vector_store %arg19[%c0_39, %c109_40], %51 {strides = array<i32>} : memref<16x640xbf16, #tpu.memory_space<vmem>>, vector<16x19xbf16>,
    %53 = arith.truncf %50 : vector<16x384xf32> to vector<16x384xbf16>
    %c0_41 = arith.constant 0 : index
    %c128_42 = arith.constant 128 : index
    %54 = vector.load %arg19[%c0_41, %c128_42] : memref<16x640xbf16, #tpu.memory_space<vmem>>, vector<16x384xbf16>
    tpu.vector_store %arg19[%c0_41, %c128_42], %53 {strides = array<i32>} : memref<16x640xbf16, #tpu.memory_space<vmem>>, vector<16x384xbf16>,
    %c0_43 = arith.constant 0 : index
    %c512 = arith.constant 512 : index
    %55 = vector.load %arg19[%c0_43, %c512] : memref<16x640xbf16, #tpu.memory_space<vmem>>, vector<16x19xbf16>
    tpu.vector_store %arg19[%c0_43, %c512], %51 {strides = array<i32>} : memref<16x640xbf16, #tpu.memory_space<vmem>>, vector<16x19xbf16>,
    %c0_44 = arith.constant 0 : index
    %c109_45 = arith.constant 109 : index
    %56 = vector.load %arg19[%c0_44, %c109_45] : memref<16x640xbf16, #tpu.memory_space<vmem>>, vector<16x384xbf16>
    %c0_46 = arith.constant 0 : index
    %c0_47 = arith.constant 0 : index
    %57 = vector.load %arg18[%c0_46, %c0_47] : memref<144x384xbf16, #tpu.memory_space<vmem>>, vector<16x384xbf16>
    tpu.vector_store %arg18[%c0_46, %c0_47], %56 {strides = array<i32>} : memref<144x384xbf16, #tpu.memory_space<vmem>>, vector<16x384xbf16>,
    %c0_48 = arith.constant 0 : index
    %c110_49 = arith.constant 110 : index
    %58 = vector.load %arg19[%c0_48, %c110_49] : memref<16x640xbf16, #tpu.memory_space<vmem>>, vector<16x384xbf16>
    %c16_50 = arith.constant 16 : index
    %c0_51 = arith.constant 0 : index
    %59 = vector.load %arg18[%c16_50, %c0_51] : memref<144x384xbf16, #tpu.memory_space<vmem>>, vector<16x384xbf16>
    tpu.vector_store %arg18[%c16_50, %c0_51], %58 {strides = array<i32>} : memref<144x384xbf16, #tpu.memory_space<vmem>>, vector<16x384xbf16>,
    %c0_52 = arith.constant 0 : index
    %c111_53 = arith.constant 111 : index
    %60 = vector.load %arg19[%c0_52, %c111_53] : memref<16x640xbf16, #tpu.memory_space<vmem>>, vector<16x384xbf16>
    %c32_54 = arith.constant 32 : index
    %c0_55 = arith.constant 0 : index
    %61 = vector.load %arg18[%c32_54, %c0_55] : memref<144x384xbf16, #tpu.memory_space<vmem>>, vector<16x384xbf16>
    tpu.vector_store %arg18[%c32_54, %c0_55], %60 {strides = array<i32>} : memref<144x384xbf16, #tpu.memory_space<vmem>>, vector<16x384xbf16>,
    %c0_56 = arith.constant 0 : index
    %c127_57 = arith.constant 127 : index
    %62 = vector.load %arg19[%c0_56, %c127_57] : memref<16x640xbf16, #tpu.memory_space<vmem>>, vector<16x384xbf16>
    %c48_58 = arith.constant 48 : index
    %c0_59 = arith.constant 0 : index
    %63 = vector.load %arg18[%c48_58, %c0_59] : memref<144x384xbf16, #tpu.memory_space<vmem>>, vector<16x384xbf16>
    tpu.vector_store %arg18[%c48_58, %c0_59], %62 {strides = array<i32>} : memref<144x384xbf16, #tpu.memory_space<vmem>>, vector<16x384xbf16>,
    %c0_60 = arith.constant 0 : index
    %c128_61 = arith.constant 128 : index
    %64 = vector.load %arg19[%c0_60, %c128_61] : memref<16x640xbf16, #tpu.memory_space<vmem>>, vector<16x384xbf16>
    %c64_62 = arith.constant 64 : index
    %c0_63 = arith.constant 0 : index
    %65 = vector.load %arg18[%c64_62, %c0_63] : memref<144x384xbf16, #tpu.memory_space<vmem>>, vector<16x384xbf16>
    tpu.vector_store %arg18[%c64_62, %c0_63], %64 {strides = array<i32>} : memref<144x384xbf16, #tpu.memory_space<vmem>>, vector<16x384xbf16>,
    %c0_64 = arith.constant 0 : index
    %c129_65 = arith.constant 129 : index
    %66 = vector.load %arg19[%c0_64, %c129_65] : memref<16x640xbf16, #tpu.memory_space<vmem>>, vector<16x384xbf16>
    %c80_66 = arith.constant 80 : index
    %c0_67 = arith.constant 0 : index
    %67 = vector.load %arg18[%c80_66, %c0_67] : memref<144x384xbf16, #tpu.memory_space<vmem>>, vector<16x384xbf16>
    tpu.vector_store %arg18[%c80_66, %c0_67], %66 {strides = array<i32>} : memref<144x384xbf16, #tpu.memory_space<vmem>>, vector<16x384xbf16>,
    %c0_68 = arith.constant 0 : index
    %c145_69 = arith.constant 145 : index
    %68 = vector.load %arg19[%c0_68, %c145_69] : memref<16x640xbf16, #tpu.memory_space<vmem>>, vector<16x384xbf16>
    %c96_70 = arith.constant 96 : index
    %c0_71 = arith.constant 0 : index
    %69 = vector.load %arg18[%c96_70, %c0_71] : memref<144x384xbf16, #tpu.memory_space<vmem>>, vector<16x384xbf16>
    tpu.vector_store %arg18[%c96_70, %c0_71], %68 {strides = array<i32>} : memref<144x384xbf16, #tpu.memory_space<vmem>>, vector<16x384xbf16>,
    %c0_72 = arith.constant 0 : index
    %c146_73 = arith.constant 146 : index
    %70 = vector.load %arg19[%c0_72, %c146_73] : memref<16x640xbf16, #tpu.memory_space<vmem>>, vector<16x384xbf16>
    %c112_74 = arith.constant 112 : index
    %c0_75 = arith.constant 0 : index
    %71 = vector.load %arg18[%c112_74, %c0_75] : memref<144x384xbf16, #tpu.memory_space<vmem>>, vector<16x384xbf16>
    tpu.vector_store %arg18[%c112_74, %c0_75], %70 {strides = array<i32>} : memref<144x384xbf16, #tpu.memory_space<vmem>>, vector<16x384xbf16>,
    %c0_76 = arith.constant 0 : index
    %c147_77 = arith.constant 147 : index
    %72 = vector.load %arg19[%c0_76, %c147_77] : memref<16x640xbf16, #tpu.memory_space<vmem>>, vector<16x384xbf16>
    %c128_78 = arith.constant 128 : index
    %c0_79 = arith.constant 0 : index
    %73 = vector.load %arg18[%c128_78, %c0_79] : memref<144x384xbf16, #tpu.memory_space<vmem>>, vector<16x384xbf16>
    tpu.vector_store %arg18[%c128_78, %c0_79], %72 {strides = array<i32>} : memref<144x384xbf16, #tpu.memory_space<vmem>>, vector<16x384xbf16>,
    %c0_80 = arith.constant 0 : index
    %c0_81 = arith.constant 0 : index
    %74 = vector.load %arg5[%c0_80, %c0_81] : memref<16x144xbf16, #tpu.memory_space<vmem>>, vector<16x144xbf16>
    %c0_82 = arith.constant 0 : index
    %c0_83 = arith.constant 0 : index
    %75 = vector.load %arg18[%c0_82, %c0_83] : memref<144x384xbf16, #tpu.memory_space<vmem>>, vector<144x384xbf16>
    %cst_84 = arith.constant dense<0.000000e+00> : vector<16x384xf32>
    %76 = tpu.matmul %74, %75, %cst_84 {dimension_numbers = #tpu.dot_dimension_numbers<[1], [0], [0], [1], [0, 0, 1, 1], [], []>} : vector<16x144xbf16>, vector<144x384xbf16>, vector<16x384xf32> -> vector<16x384xf32>
    %c0_85 = arith.constant 0 : index
    %c0_86 = arith.constant 0 : index
    %77 = vector.load %arg6[%c0_85, %c0_86] : memref<16x1xf32, #tpu.memory_space<vmem>>, vector<16x1xf32>
    %78 = vector.broadcast %77 : vector<16x1xf32> to vector<16x384xf32>
    %79 = arith.addf %76, %78 : vector<16x384xf32>
    %c1 = arith.constant 1 : index
    %80 = memref.load %arg16[%c1] : memref<2xf32, #tpu.memory_space<smem>>
    %cst_87 = arith.constant 0.000000e+00 : f32
    %81 = vector.broadcast %cst_87 : f32 to vector<16x384xf32>
    %82 = arith.cmpf oge, %79, %81 : vector<16x384xf32>
    %83 = vector.broadcast %80 : f32 to vector<16x384xf32>
    %84 = arith.mulf %83, %79 : vector<16x384xf32>
    %85 = arith.select %82, %79, %84 : vector<16x384xi1>, vector<16x384xf32>
    %86 = vector.broadcast %0 : vector<1x384xf32> to vector<16x384xf32>
    %87 = arith.mulf %85, %86 : vector<16x384xf32>
    %cst_88 = arith.constant dense<0.000000e+00> : vector<16xf32>
    %88 = vector.multi_reduction <add>, %50, %cst_88 [1] : vector<16x384xf32> to vector<16xf32>
    %89 = vector.shape_cast %88 : vector<16xf32> to vector<16x1xf32>
    %cst_89 = arith.constant 2.560000e+02 : f32
    %90 = vector.broadcast %cst_89 : f32 to vector<16x1xf32>
    %91 = arith.divf %89, %90 : vector<16x1xf32>
    %cst_90 = arith.constant dense<0.000000e+00> : vector<16xf32>
    %92 = vector.multi_reduction <add>, %87, %cst_90 [1] : vector<16x384xf32> to vector<16xf32>
    %93 = vector.shape_cast %92 : vector<16xf32> to vector<16x1xf32>
    %cst_91 = arith.constant 2.560000e+02 : f32
    %94 = vector.broadcast %cst_91 : f32 to vector<16x1xf32>
    %95 = arith.divf %93, %94 : vector<16x1xf32>
    %96 = arith.mulf %50, %50 : vector<16x384xf32>
    %cst_92 = arith.constant dense<0.000000e+00> : vector<16xf32>
    %97 = vector.multi_reduction <add>, %96, %cst_92 [1] : vector<16x384xf32> to vector<16xf32>
    %98 = vector.shape_cast %97 : vector<16xf32> to vector<16x1xf32>
    %cst_93 = arith.constant 2.560000e+02 : f32
    %99 = vector.broadcast %cst_93 : f32 to vector<16x1xf32>
    %100 = arith.divf %98, %99 : vector<16x1xf32>
    %101 = arith.mulf %91, %91 : vector<16x1xf32>
    %102 = arith.subf %100, %101 : vector<16x1xf32>
    %cst_94 = arith.constant 0.000000e+00 : f32
    %103 = vector.broadcast %cst_94 : f32 to vector<16x1xf32>
    %104 = arith.maximumf %102, %103 : vector<16x1xf32>
    %105 = arith.mulf %87, %87 : vector<16x384xf32>
    %cst_95 = arith.constant dense<0.000000e+00> : vector<16xf32>
    %106 = vector.multi_reduction <add>, %105, %cst_95 [1] : vector<16x384xf32> to vector<16xf32>
    %107 = vector.shape_cast %106 : vector<16xf32> to vector<16x1xf32>
    %cst_96 = arith.constant 2.560000e+02 : f32
    %108 = vector.broadcast %cst_96 : f32 to vector<16x1xf32>
    %109 = arith.divf %107, %108 : vector<16x1xf32>
    %110 = arith.mulf %95, %95 : vector<16x1xf32>
    %111 = arith.subf %109, %110 : vector<16x1xf32>
    %cst_97 = arith.constant 0.000000e+00 : f32
    %112 = vector.broadcast %cst_97 : f32 to vector<16x1xf32>
    %113 = arith.maximumf %111, %112 : vector<16x1xf32>
    %114 = tpu.concatenate %91, %95 in 0 : vector<16x1xf32>, vector<16x1xf32> -> vector<32x1xf32>
    %115 = math.sqrt %104 : vector<16x1xf32>
    %116 = math.sqrt %113 : vector<16x1xf32>
    %117 = tpu.concatenate %115, %116 in 0 : vector<16x1xf32>, vector<16x1xf32> -> vector<32x1xf32>
    %c0_98 = arith.constant 0 : index
    %c0_99 = arith.constant 0 : index
    %118 = vector.load %arg7[%c0_98, %c0_99] : memref<2x32xf32, #tpu.memory_space<vmem>>, vector<2x32xf32>
    %cst_100 = arith.constant dense<0.000000e+00> : vector<2x1xf32>
    %119 = tpu.matmul %118, %114, %cst_100 {dimension_numbers = #tpu.dot_dimension_numbers<[1], [0], [0], [1], [0, 0, 1, 1], [], []>} : vector<2x32xf32>, vector<32x1xf32>, vector<2x1xf32> -> vector<2x1xf32>
    %c0_101 = arith.constant 0 : index
    %c0_102 = arith.constant 0 : index
    %120 = vector.load %arg8[%c0_101, %c0_102] : memref<2x1xf32, #tpu.memory_space<vmem>>, vector<2x1xf32>
    %121 = arith.addf %119, %120 : vector<2x1xf32>
    %cst_103 = arith.constant 0.000000e+00 : f32
    %122 = vector.broadcast %cst_103 : f32 to vector<2x1xf32>
    %123 = arith.maximumf %121, %122 : vector<2x1xf32>
    %c0_104 = arith.constant 0 : index
    %c0_105 = arith.constant 0 : index
    %124 = vector.load %arg9[%c0_104, %c0_105] : memref<2x32xf32, #tpu.memory_space<vmem>>, vector<2x32xf32>
    %cst_106 = arith.constant dense<0.000000e+00> : vector<2x1xf32>
    %125 = tpu.matmul %124, %117, %cst_106 {dimension_numbers = #tpu.dot_dimension_numbers<[1], [0], [0], [1], [0, 0, 1, 1], [], []>} : vector<2x32xf32>, vector<32x1xf32>, vector<2x1xf32> -> vector<2x1xf32>
    %c0_107 = arith.constant 0 : index
    %c0_108 = arith.constant 0 : index
    %126 = vector.load %arg10[%c0_107, %c0_108] : memref<2x1xf32, #tpu.memory_space<vmem>>, vector<2x1xf32>
    %127 = arith.addf %125, %126 : vector<2x1xf32>
    %cst_109 = arith.constant 0.000000e+00 : f32
    %128 = vector.broadcast %cst_109 : f32 to vector<2x1xf32>
    %129 = arith.maximumf %127, %128 : vector<2x1xf32>
    %c0_110 = arith.constant 0 : index
    %c0_111 = arith.constant 0 : index
    %130 = vector.load %arg11[%c0_110, %c0_111] : memref<32x2xf32, #tpu.memory_space<vmem>>, vector<32x2xf32>
    %131 = arith.addf %123, %129 : vector<2x1xf32>
    %cst_112 = arith.constant dense<0.000000e+00> : vector<32x1xf32>
    %132 = tpu.matmul %130, %131, %cst_112 {dimension_numbers = #tpu.dot_dimension_numbers<[1], [0], [0], [1], [0, 0, 1, 1], [], []>} : vector<32x2xf32>, vector<2x1xf32>, vector<32x1xf32> -> vector<32x1xf32>
    %c0_113 = arith.constant 0 : index
    %c0_114 = arith.constant 0 : index
    %133 = vector.load %arg12[%c0_113, %c0_114] : memref<32x1xf32, #tpu.memory_space<vmem>>, vector<32x1xf32>
    %134 = arith.addf %132, %133 : vector<32x1xf32>
    %135 = arith.negf %134 : vector<32x1xf32>
    %136 = math.exp %135 : vector<32x1xf32>
    %cst_115 = arith.constant 1.000000e+00 : f32
    %137 = vector.broadcast %cst_115 : f32 to vector<32x1xf32>
    %138 = arith.addf %137, %136 : vector<32x1xf32>
    %139 = arith.divf %137, %138 : vector<32x1xf32>
    %140 = vector.extract_strided_slice %139 {offsets = [0, 0], sizes = [16, 1], strides = [1, 1]} : vector<32x1xf32> to vector<16x1xf32>
    %141 = vector.broadcast %140 : vector<16x1xf32> to vector<16x384xf32>
    %142 = arith.mulf %50, %141 : vector<16x384xf32>
    %143 = vector.extract_strided_slice %139 {offsets = [16, 0], sizes = [16, 1], strides = [1, 1]} : vector<32x1xf32> to vector<16x1xf32>
    %144 = vector.broadcast %143 : vector<16x1xf32> to vector<16x384xf32>
    %145 = arith.mulf %87, %144 : vector<16x384xf32>
    %c0_116 = arith.constant 0 : index
    %c0_117 = arith.constant 0 : index
    %146 = vector.load %arg13[%c0_116, %c0_117] : memref<16x16xf32, #tpu.memory_space<vmem>>, vector<16x16xf32>
    %cst_118 = arith.constant dense<0.000000e+00> : vector<16x384xf32>
    %147 = tpu.matmul %146, %142, %cst_118 {dimension_numbers = #tpu.dot_dimension_numbers<[1], [0], [0], [1], [0, 0, 1, 1], [], []>} : vector<16x16xf32>, vector<16x384xf32>, vector<16x384xf32> -> vector<16x384xf32>
    %c0_119 = arith.constant 0 : index
    %c0_120 = arith.constant 0 : index
    %148 = vector.load %arg14[%c0_119, %c0_120] : memref<16x16xf32, #tpu.memory_space<vmem>>, vector<16x16xf32>
    %cst_121 = arith.constant dense<0.000000e+00> : vector<16x384xf32>
    %149 = tpu.matmul %148, %145, %cst_121 {dimension_numbers = #tpu.dot_dimension_numbers<[1], [0], [0], [1], [0, 0, 1, 1], [], []>} : vector<16x16xf32>, vector<16x384xf32>, vector<16x384xf32> -> vector<16x384xf32>
    %150 = arith.addf %147, %149 : vector<16x384xf32>
    %c0_122 = arith.constant 0 : index
    %c0_123 = arith.constant 0 : index
    %151 = vector.load %arg15[%c0_122, %c0_123] : memref<16x1xf32, #tpu.memory_space<vmem>>, vector<16x1xf32>
    %152 = vector.broadcast %151 : vector<16x1xf32> to vector<16x384xf32>
    %153 = arith.addf %150, %152 : vector<16x384xf32>
    %c0_124 = arith.constant 0 : index
    %c0_125 = arith.constant 0 : index
    %c128_126 = arith.constant 128 : index
    %154 = vector.load %arg1[%c0_124, %c0_125, %c128_126] : memref<1x16x531xf32, #tpu.memory_space<vmem>>, vector<1x16x384xf32>
    %155 = vector.shape_cast %154 : vector<1x16x384xf32> to vector<16x384xf32>
    %156 = arith.addf %153, %155 : vector<16x384xf32>
    %c0_127 = arith.constant 0 : index
    %c0_128 = arith.constant 0 : index
    %c0_129 = arith.constant 0 : index
    %157 = vector.load %arg17[%c0_127, %c0_128, %c0_129] : memref<1x16x384xf32, #tpu.memory_space<vmem>>, vector<1x16x384xf32>
    %158 = vector.shape_cast %157 : vector<1x16x384xf32> to vector<16x384xf32>
    %159 = vector.shape_cast %156 : vector<16x384xf32> to vector<1x16x384xf32>
    tpu.vector_store %arg17[%c0_127, %c0_128, %c0_129], %159 {strides = array<i32>} : memref<1x16x384xf32, #tpu.memory_space<vmem>>, vector<1x16x384xf32>,
    return
  }
  func.func @transform_0(%arg0: i32) -> (i32, i32, i32) {
    %c0_i32 = arith.constant 0 : i32
    %c0_i32_0 = arith.constant 0 : i32
    %c0_i32_1 = arith.constant 0 : i32
    return %arg0, %c0_i32, %c0_i32_0 : i32, i32, i32
  }
  func.func @transform_1(%arg0: i32) -> (i32, i32) {
    %c0_i32 = arith.constant 0 : i32
    %c0_i32_0 = arith.constant 0 : i32
    %c0_i32_1 = arith.constant 0 : i32
    return %c0_i32, %c0_i32_0 : i32, i32
  }
  func.func @transform_2(%arg0: i32) -> (i32, i32) {
    %c0_i32 = arith.constant 0 : i32
    %c0_i32_0 = arith.constant 0 : i32
    %c0_i32_1 = arith.constant 0 : i32
    return %c0_i32, %c0_i32_0 : i32, i32
  }
  func.func @transform_3(%arg0: i32) -> (i32, i32) {
    %c0_i32 = arith.constant 0 : i32
    %c0_i32_0 = arith.constant 0 : i32
    %c0_i32_1 = arith.constant 0 : i32
    return %c0_i32, %c0_i32_0 : i32, i32
  }
  func.func @transform_4(%arg0: i32) -> (i32, i32) {
    %c0_i32 = arith.constant 0 : i32
    %c0_i32_0 = arith.constant 0 : i32
    %c0_i32_1 = arith.constant 0 : i32
    return %c0_i32, %c0_i32_0 : i32, i32
  }
  func.func @transform_5(%arg0: i32) -> (i32, i32) {
    %c0_i32 = arith.constant 0 : i32
    %c0_i32_0 = arith.constant 0 : i32
    %c0_i32_1 = arith.constant 0 : i32
    return %c0_i32, %c0_i32_0 : i32, i32
  }
  func.func @transform_6(%arg0: i32) -> (i32, i32) {
    %c0_i32 = arith.constant 0 : i32
    %c0_i32_0 = arith.constant 0 : i32
    %c0_i32_1 = arith.constant 0 : i32
    return %c0_i32, %c0_i32_0 : i32, i32
  }
  func.func @transform_7(%arg0: i32) -> (i32, i32) {
    %c0_i32 = arith.constant 0 : i32
    %c0_i32_0 = arith.constant 0 : i32
    %c0_i32_1 = arith.constant 0 : i32
    return %c0_i32, %c0_i32_0 : i32, i32
  }
  func.func @transform_8(%arg0: i32) -> (i32, i32) {
    %c0_i32 = arith.constant 0 : i32
    %c0_i32_0 = arith.constant 0 : i32
    %c0_i32_1 = arith.constant 0 : i32
    return %c0_i32, %c0_i32_0 : i32, i32
  }
  func.func @transform_9(%arg0: i32) -> (i32, i32) {
    %c0_i32 = arith.constant 0 : i32
    %c0_i32_0 = arith.constant 0 : i32
    %c0_i32_1 = arith.constant 0 : i32
    return %c0_i32, %c0_i32_0 : i32, i32
  }
  func.func @transform_10(%arg0: i32) -> (i32, i32) {
    %c0_i32 = arith.constant 0 : i32
    %c0_i32_0 = arith.constant 0 : i32
    %c0_i32_1 = arith.constant 0 : i32
    return %c0_i32, %c0_i32_0 : i32, i32
  }
  func.func @transform_11(%arg0: i32) -> (i32, i32) {
    %c0_i32 = arith.constant 0 : i32
    %c0_i32_0 = arith.constant 0 : i32
    %c0_i32_1 = arith.constant 0 : i32
    return %c0_i32, %c0_i32_0 : i32, i32
  }
  func.func @transform_12(%arg0: i32) -> (i32, i32) {
    %c0_i32 = arith.constant 0 : i32
    %c0_i32_0 = arith.constant 0 : i32
    %c0_i32_1 = arith.constant 0 : i32
    return %c0_i32, %c0_i32_0 : i32, i32
  }
  func.func @transform_13(%arg0: i32) -> (i32, i32) {
    %c0_i32 = arith.constant 0 : i32
    %c0_i32_0 = arith.constant 0 : i32
    %c0_i32_1 = arith.constant 0 : i32
    return %c0_i32, %c0_i32_0 : i32, i32
  }
  func.func @transform_14(%arg0: i32) -> (i32, i32) {
    %c0_i32 = arith.constant 0 : i32
    %c0_i32_0 = arith.constant 0 : i32
    %c0_i32_1 = arith.constant 0 : i32
    return %c0_i32, %c0_i32_0 : i32, i32
  }
  func.func @transform_15(%arg0: i32) -> i32 {
    %c0_i32 = arith.constant 0 : i32
    %c0_i32_0 = arith.constant 0 : i32
    return %c0_i32 : i32
  }
  func.func @transform_16(%arg0: i32) -> (i32, i32, i32) {
    %c0_i32 = arith.constant 0 : i32
    %c0_i32_0 = arith.constant 0 : i32
    %c0_i32_1 = arith.constant 0 : i32
    return %arg0, %c0_i32, %c0_i32_0 : i32, i32, i32
  }
}

</mosaic_0001>

<bundles_post_ra>
// kernel: dsab1_forward.1
= control target key start
LH: loop header
LB: loop body
LE: loop exit
PB: predicated region body
PF: predicated region fallthrough
CT: control target
= control target key end

     0   :  { %s3013_s0 = inlined_call_operand.vmem [shape: f32[2,16,531], index: 0, kind: input, shape index: {}]   ;;  %s3014_s1 = inlined_call_operand.vmem [shape: f32[1,384], index: 1, kind: input, shape index: {}]   ;;  %s3015_s2 = inlined_call_operand.vmem [shape: bf16[16,144], index: 2, kind: input, shape index: {}]   ;;  %s3016_s3 = inlined_call_operand.vmem [shape: f32[16,1], index: 3, kind: input, shape index: {}]   ;;  %s3017_s4 = inlined_call_operand.vmem [shape: bf16[16,144], index: 4, kind: input, shape index: {}]   ;;  %s3018_s5 = inlined_call_operand.vmem [shape: f32[16,1], index: 5, kind: input, shape index: {}]   ;;  %s3019_s6 = inlined_call_operand.vmem [shape: f32[2,32], index: 6, kind: input, shape index: {}]   ;;  %s3020_s7 = inlined_call_operand.vmem [shape: f32[2,1], index: 7, kind: input, shape index: {}]   ;;  %s3021_s8 = inlined_call_operand.vmem [shape: f32[2,32], index: 8, kind: input, shape index: {}]   ;;  %s3022_s9 = inlined_call_operand.vmem [shape: f32[2,1], index: 9, kind: input, shape index: {}]   ;;  %s3023_s10 = inlined_call_operand.vmem [shape: f32[32,2], index: 10, kind: input, shape index: {}]   ;;  %s3024_s11 = inlined_call_operand.vmem [shape: f32[32,1], index: 11, kind: input, shape index: {}]   ;;  %s3025_s12 = inlined_call_operand.vmem [shape: f32[16,16], index: 12, kind: input, shape index: {}]   ;;  %s3026_s13 = inlined_call_operand.vmem [shape: f32[16,16], index: 13, kind: input, shape index: {}]   ;;  %s3027_s14 = inlined_call_operand.vmem [shape: f32[16,1], index: 14, kind: input, shape index: {}]   ;;  %s3028_s15 = inlined_call_operand.vmem [shape: f32[2], index: 15, kind: input, shape index: {}]   ;;  %s3029_s16 = inlined_call_operand.vmem [shape: f32[2,16,384], index: 16, kind: output, shape index: {}]  }
   0x1   :  { %3030 = sst [smem:[#allocation7_spill]] %s3013_s0 }
   0x2   :  { %21 = vsyncpa [#allocation5], 0  ;;  %s2547_s21 = smov 0  }
   0x3 LB: > { %s2217_s22 = sadd.s32 4294967295, %s2447_s21   ;;  %p2219_p0 = scmp.ge.s32.totalorder %s2447_s21, 1  ;;  %s2447_s21 = sphi %s2547_s21, %s27_s21  }
   0x4   : > { %p399_p1 = scmp.lt.s32.totalorder %s2447_s21, 3  ;;  %s454_s25 = sshll.u32 %s3028_s15, 4  ;;  %s455_s25 = int_to_ptr.vmem [resolvable:$true] %s454_s25 }
   0x5   : > { %p2367_p3 = scmp.eq.s32.totalorder %s2217_s22, 0  ;;  %s2422_s27 = scalar_lea.vmem %s455_s25, 16 }
   0x6   : > { %p2558_p2 = pnand %p2219_p0, %p399_p1  ;;  %p2423_p6 = scmp.ne.s32.totalorder %s455_s25, %s2422_s27 }
   0x7   : > { %p2430_p10 = scmp.lt.s32.totalorder %s455_s25, %s455_s25  ;;  %p2431_p11 = scmp.lt.s32.totalorder %s2422_s27, %s2422_s27 }
   0x8   : > { %p2363_p4 = pneg %p2558_p2 }
   0x9   : > { %p2432_p12 = por %p2431_p11, %p2430_p10 }
   0xa   : > { %p2364_p5 = pnand %p2367_p3, %p2363_p4 }
   0xc   : > { %p2424_p7 = pneg %p2364_p5 }
   0xe   : > { %p2425_p8 = pnand %p2424_p7, %p2423_p6 }
  0x10   : > { %p2426_p9 = pneg %p2425_p8 }
  0x12   : > { %p2433_p13 = pnand %p2432_p12, %p2426_p9 }
  0x14   : > { %2436 = shalt.err (!%p2433_p13)
}
  0x15   : > { %s2449_s28 = smov [#allocation4]   ;;  %475 = sbr.rel (%p2558_p2) target bundleno = 1850 (0x73a), region = 84 }
  0x16   : > { %2366 = dma.vmem_to_smem (!%p2364_p5), %s455_s25, 16, %s2449_s28, [#allocation5]  }
  0x1c   : > { %2442 = dma.done.wait (%p2367_p3), [#allocation5], 16  }
  0x1d   : > { %2444 = vsyncadd (%p2367_p3), [#allocation5], 4294967280 }
  0x1e   : > { %481 = sfence }
  0x1f   : > { %p526_p0 = scmp.lt.s32.totalorder %s2217_s22, 1  ;;  %vm562_vm0 = vcmask 154624   ;;  %v2450_v0 = vmov 0   ;;  %s3032_s17 = sld [smem:[#allocation7_spill]]  ;;  %v2394_v16 = vld [vmem:[%s3015_s2 + $0x4] ss:$8 sps:$4 sm:$0xff]  }
  0x20   : > { %1011 = vst.msk [vmem:[#allocation3 + $0x20] sm:$0xff] %vm562_vm0, %v2450_v0  ;;  %919 = vmatprep.subr.bf16.mxu1 %v2450_v0  ;;  %2391 = vset.pattern.permute.xlu1 %v2450_v0  ;;  %s2451_s19 = smov 19   ;;  %s2452_s20 = smov 18   ;;  %vm872_vm1 = vcmask 130048   ;;  %v851_v17 = vld [vmem:[%s3016_s3] sm:$0xff]  ;;  %v852_v18 = vld [vmem:[%s3016_s3 + $0x8] sm:$0xff] }
  0x21   : > { %s3034_s22 = smov (!%p526_p0, %s2217_s22), 1  ;;  %2390 = vset.pattern.permute.xlu0 %v2450_v0  ;;  %s2453_s23 = smov 17   ;;  %2228 = vmatprep.mubr.msk.bf16.mxu0 %vm872_vm1, %v2394_v16  ;;  %vm596_vm2 = vcmask 146432   ;;  %vm630_vm3 = vcmask 138240   ;;  %vm664_vm4 = vcmask 7168   ;;  %vm710_vm5 = vcmask 1039360  }
  0x22   : > { %s2357_s29 = smul.u32 80, %s3034_s22  ;;  %s2454_s24 = smov 1   ;;  %2229 = vmatprep.mubr.msk.bf16.mxu1 %vm872_vm1, %v2394_v16  ;;  %vm744_vm6 = vcmask 908288   ;;  %vm778_vm7 = vcmask 900096   ;;  %vm812_vm8 = vcmask 891904   ;;  %vm1002_vm9 = vcmask 1048424  }
  0x23   : > { %s2455_s25 = smov 127   ;;  %s2456_s26 = smov 111   ;;  %1003 = vst.msk [vmem:[#allocation3] sm:$0xff] %vm1002_vm9, %v2450_v0 }
  0x24   : > { %s2457_s27 = smov 110   ;;  %s2458_s30 = smov 109  }
  0x25   : > { %s2580_s18 = scalar_lea.vmem %s3032_s17, %s2357_s29  ;;  %s960_s28 = sld [smem:[#allocation4]] }
  0x26   : > { %v539_v1 = vld [vmem:[%s2580_s18 + $0x8] sm:$0xff]  ;;  %v543_v2 = vld [vmem:[%s2580_s18 + $0x30] sm:$0xff]  ;;  %v538_v3 = vld [vmem:[%s2580_s18] sm:$0xff]  ;;  %s2234_s17 = sld [smem:[#allocation4 + $0x1]] }
  0x27   : > { %v2585_v4 = vpack.c.bf16 %v543_v2, %v539_v1  ;;  %v542_v5 = vld [vmem:[%s2580_s18 + $0x28] sm:$0xff]  ;;  %v540_v6 = vld [vmem:[%s2580_s18 + $0x10] sm:$0xff]  ;;  %v544_v7 = vld [vmem:[%s2580_s18 + $0x38] sm:$0xff] }
  0x28   : > { %v546_v8 = vpack.c.bf16 %v542_v5, %v538_v3  ;;  %v2592_v9 = vpack.c.bf16 %v544_v7, %v540_v6  ;;  %v541_v10 = vld [vmem:[%s2580_s18 + $0x18] sm:$0xff]  ;;  %v545_v11 = vld [vmem:[%s2580_s18 + $0x40] sm:$0xff]  ;;  %v693_v14 = vld [vmem:[%s2580_s18 + $0x48] sm:$0xff] }
  0x29   : > { %556 = vrot.lane.b32.xlu0 %v2585_v4, %s2451_s19  ;;  %v2603_v12 = vpack.c.bf16 %v545_v11, %v541_v10  ;;  %v689_v13 = vld [vmem:[%s2580_s18 + $0x20] sm:$0xff] }
  0x2a   : > { %554 = vrot.lane.b32.xlu1 %v546_v8, %s2451_s19  ;;  %v697_v15 = vpack.c.bf16 %v693_v14, %v689_v13  ;;  %v1012_v13 = vld [vmem:[#allocation3] sm:$0xff] }
  0x2b   : > { %v2709_v14 = vld [vmem:[#allocation3 + $0x20] sm:$0xff] }
  0x2d   : > { %558 = vrot.lane.b32.xlu0 %v2592_v9, %s2451_s19 }
  0x2e   : > { %590 = vrot.lane.b32.xlu1 %v2585_v4, %s2452_s20 }
  0x31   : > { %592 = vrot.lane.b32.xlu0 %v2592_v9, %s2452_s20 }
  0x32   : > { %588 = vrot.lane.b32.xlu1 %v546_v8, %s2452_s20 }
  0x35   : > { %560 = vrot.lane.b32.xlu0 %v2603_v12, %s2451_s19 }
  0x36   : > { %624 = vrot.lane.b32.xlu1 %v2585_v4, %s2453_s23 }
  0x39   : > { %626 = vrot.lane.b32.xlu0 %v2592_v9, %s2453_s23 }
  0x3a   : > { %622 = vrot.lane.b32.xlu1 %v546_v8, %s2453_s23 }
  0x3d   : > { %594 = vrot.lane.b32.xlu0 %v2603_v12, %s2452_s20 }
  0x3e   : > { %658 = vrot.lane.b32.xlu1 %v2585_v4, %s2454_s24 }
  0x41   : > { %660 = vrot.lane.b32.xlu0 %v2592_v9, %s2454_s24 }
  0x42   : > { %656 = vrot.lane.b32.xlu1 %v546_v8, %s2454_s24  ;;  %v2392_v8 = vld [vmem:[%s3015_s2] ss:$8 sps:$4 sm:$0xff]  }
  0x45   : > { %628 = vrot.lane.b32.xlu0 %v2603_v12, %s2453_s23 }
  0x46   : > { %662 = vrot.lane.b32.xlu1 %v2603_v12, %s2454_s24 }
  0x49   : > { %704 = vrot.lane.b32.xlu0 %v2592_v9, %s2455_s25 }
  0x4a   : > { %706 = vrot.lane.b32.xlu1 %v2603_v12, %s2455_s25 }
  0x4d   : > { %702 = vrot.lane.b32.xlu0 %v2585_v4, %s2455_s25 }
  0x4e   : > { %738 = vrot.lane.b32.xlu1 %v2592_v9, %s2456_s26 }
  0x51   : > { %740 = vrot.lane.b32.xlu0 %v2603_v12, %s2456_s26 }
  0x52   : > { %736 = vrot.lane.b32.xlu1 %v2585_v4, %s2456_s26 }
  0x55   : > { %708 = vrot.lane.b32.xlu0 %v697_v15, %s2455_s25 }
  0x56   : > { %772 = vrot.lane.b32.xlu1 %v2592_v9, %s2457_s27 }
  0x59   : > { %774 = vrot.lane.b32.xlu0 %v2603_v12, %s2457_s27 }
  0x5a   : > { %770 = vrot.lane.b32.xlu1 %v2585_v4, %s2457_s27 }
  0x5d   : > { %742 = vrot.lane.b32.xlu0 %v697_v15, %s2456_s26 }
  0x5e   : > { %806 = vrot.lane.b32.xlu1 %v2592_v9, %s2458_s30 }
  0x61   : > { %808 = vrot.lane.b32.xlu0 %v2603_v12, %s2458_s30 }
  0x62   : > { %804 = vrot.lane.b32.xlu1 %v2585_v4, %s2458_s30 }
  0x65   : > { %776 = vrot.lane.b32.xlu0 %v697_v15, %s2457_s27 }
  0x66   : > { %810 = vrot.lane.b32.xlu1 %v697_v15, %s2458_s30  ;;  %v981_v15 = vlaneseq }
  0x68   : > { %v982_v16 = vshrl.u32 %v981_v15, 7 }
  0x69   : > { %855 = vperm.xlu0 %2390, %v851_v17  }
  0x6a   : > { %860 = vperm.xlu1 %2391, %v852_v18   ;;  %v983_v17 = vsub.s32 0, %v982_v16 }
  0x6d   : > { %1132 = vrot.lane.b32.xlu0 %v2709_v14, %s2455_s25 }
  0x6e   : > { %1020 = vrot.lane.b32.xlu1 %v1012_v13, %s2451_s19 }
  0x72   : > { %1045 = vrot.lane.b32.xlu1 %v1012_v13, %s2452_s20 }
  0x76   : > { %1070 = vrot.lane.b32.xlu1 %v1012_v13, %s2453_s23 }
  0x7a   : > { %1095 = vrot.lane.b32.xlu1 %v1012_v13, %s2454_s24 }
  0x9b   : > { %v557_v19 = vpop.permute.xlu0 %556 }
  0x9c   : > { %v555_v20 = vpop.permute.xlu1 %554 }
  0x9d   : > { %v563_v24 = vsel %vm562_vm0, %v555_v20, %v557_v19 }
  0x9f   : > { %v559_v21 = vpop.permute.xlu0 %558 }
  0xa0   : > { %v591_v22 = vpop.permute.xlu1 %590  ;;  %v564_v23 = vsel %vm562_vm0, %v557_v19, %v559_v21  ;;  %v537_v19 = vld [vmem:[%s3014_s1] sm:$0x7] }
  0xa1   : > { %876 = vmatprep.subr.bf16.mxu0 %v564_v23 }
  0xa2   : > { %877 = vmatpush1.bf16.msra.mxu0 %v563_v24  ;;  %v987_v24 = vsub.s32 1, %v982_v16 }
  0xa3   : > { %v593_v25 = vpop.permute.xlu0 %592 }
  0xa4   : > { %v589_v26 = vpop.permute.xlu1 %588  ;;  %v598_v27 = vsel %vm596_vm2, %v591_v22, %v593_v25 }
  0xa5   : > { %878 = vmatprep.subr.bf16.mxu0 %v598_v27  ;;  %v597_v28 = vsel %vm596_vm2, %v589_v26, %v591_v22  ;;  %v2716_v26 = vrot.slane %v537_v19, %v983_v17 }
  0xa6   : > { %879 = vmatpush1.bf16.msra.mxu0 %v597_v28 }
  0xa7   : > { %v561_v29 = vpop.permute.xlu0 %560 }
  0xa8   : > { %v625_v30 = vpop.permute.xlu1 %624  ;;  %v565_v31 = vsel %vm562_vm0, %v559_v21, %v561_v29  ;;  %v967_v21 = vstv %s960_s28  ;;  %s2358_s28 = smul.u32 48, %s3034_s22 }
  0xa9   : > { %920 = vmatpush1.bf16.msra.mxu1 %v565_v31 }
  0xaa   : > { %921 = vmatprep.subr.bf16.mxu1 %v2450_v0 }
  0xab   : > { %v627_v32 = vpop.permute.xlu0 %626 }
  0xac   : > { %v623_v33 = vpop.permute.xlu1 %622  ;;  %v632_v34 = vsel %vm630_vm3, %v625_v30, %v627_v32 }
  0xad   : > { %880 = vmatprep.subr.bf16.mxu0 %v632_v34  ;;  %v631_v35 = vsel %vm630_vm3, %v623_v33, %v625_v30  ;;  %v2718_v34 = vrot.slane %v537_v19, %v987_v24 }
  0xae   : > { %881 = vmatpush1.bf16.msra.mxu0 %v631_v35 }
  0xaf   : > { %v595_v36 = vpop.permute.xlu0 %594 }
  0xb0   : > { %v659_v37 = vpop.permute.xlu1 %658  ;;  %v599_v38 = vsel %vm596_vm2, %v593_v25, %v595_v36 }
  0xb1   : > { %922 = vmatpush1.bf16.msra.mxu1 %v599_v38 }
  0xb2   : > { %923 = vmatprep.subr.bf16.mxu1 %v2450_v0 }
  0xb3   : > { %v661_v39 = vpop.permute.xlu0 %660 }
  0xb4   : > { %v657_v40 = vpop.permute.xlu1 %656  ;;  %v666_v41 = vsel %vm664_vm4, %v659_v37, %v661_v39 }
  0xb5   : > { %882 = vmatprep.subr.bf16.mxu0 %v666_v41  ;;  %v665_v42 = vsel %vm664_vm4, %v657_v40, %v659_v37 }
  0xb6   : > { %883 = vmatpush1.bf16.msra.mxu0 %v665_v42  ;;  %v991_v42 = vsub.s32 2, %v982_v16 }
  0xb7   : > { %v629_v43 = vpop.permute.xlu0 %628  ;;  %884 = vmatprep.subr.bf16.mxu0 %v2592_v9 }
  0xb8   : > { %v663_v44 = vpop.permute.xlu1 %662  ;;  %v633_v45 = vsel %vm630_vm3, %v627_v32, %v629_v43 }
  0xb9   : > { %924 = vmatpush1.bf16.msra.mxu1 %v633_v45  ;;  %v667_v48 = vsel %vm664_vm4, %v661_v39, %v663_v44 }
  0xba   : > { %885 = vmatpush1.bf16.msra.mxu0 %v2585_v4  ;;  %925 = vmatprep.subr.bf16.mxu1 %v2450_v0 }
  0xbb   : > { %v705_v46 = vpop.permute.xlu0 %704 }
  0xbc   : > { %v707_v47 = vpop.permute.xlu1 %706 }
  0xbd   : > { %v712_v49 = vsel %vm710_vm5, %v705_v46, %v707_v47  ;;  %926 = vmatpush1.bf16.msra.mxu1 %v667_v48 }
  0xbe   : > { %886 = vmatprep.subr.bf16.mxu0 %v712_v49  ;;  %927 = vmatprep.subr.bf16.mxu1 %v2450_v0 }
  0xbf   : > { %v703_v50 = vpop.permute.xlu0 %702 }
  0xc0   : > { %v739_v51 = vpop.permute.xlu1 %738  ;;  %v711_v52 = vsel %vm710_vm5, %v703_v50, %v705_v46 }
  0xc1   : > { %887 = vmatpush1.bf16.msra.mxu0 %v711_v52  ;;  %928 = vmatpush1.bf16.msra.mxu1 %v2603_v12 }
  0xc2   : > { %929 = vmatprep.subr.bf16.mxu1 %v2450_v0 }
  0xc3   : > { %v741_v53 = vpop.permute.xlu0 %740 }
  0xc4   : > { %v737_v54 = vpop.permute.xlu1 %736  ;;  %v746_v55 = vsel %vm744_vm6, %v739_v51, %v741_v53 }
  0xc5   : > { %888 = vmatprep.subr.bf16.mxu0 %v746_v55  ;;  %v745_v56 = vsel %vm744_vm6, %v737_v54, %v739_v51  ;;  %v2740_v55 = vrot.slane %v537_v19, %v991_v42 }
  0xc6   : > { %889 = vmatpush1.bf16.msra.mxu0 %v745_v56 }
  0xc7   : > { %v709_v57 = vpop.permute.xlu0 %708 }
  0xc8   : > { %v773_v58 = vpop.permute.xlu1 %772  ;;  %v713_v59 = vsel %vm710_vm5, %v707_v47, %v709_v57 }
  0xc9   : > { %930 = vmatpush1.bf16.msra.mxu1 %v713_v59 }
  0xca   : > { %931 = vmatprep.subr.bf16.mxu1 %v2450_v0 }
  0xcb   : > { %v775_v60 = vpop.permute.xlu0 %774 }
  0xcc   : > { %v771_v61 = vpop.permute.xlu1 %770  ;;  %v780_v62 = vsel %vm778_vm7, %v773_v58, %v775_v60 }
  0xcd   : > { %890 = vmatprep.subr.bf16.mxu0 %v780_v62  ;;  %v779_v63 = vsel %vm778_vm7, %v771_v61, %v773_v58  ;;  %v1247_v62 = vld [vmem:[%s3018_s5] sm:$0xff] }
  0xce   : > { %891 = vmatpush1.bf16.msra.mxu0 %v779_v63  ;;  %v2395_v63 = vld [vmem:[%s3017_s4 + $0x4] ss:$8 sps:$4 sm:$0xff]  }
  0xcf   : > { %v743_v1 = vpop.permute.xlu0 %742 }
  0xd0   : > { %v807_v2 = vpop.permute.xlu1 %806  ;;  %v747_v3 = vsel %vm744_vm6, %v741_v53, %v743_v1  ;;  %v1248_v1 = vld [vmem:[%s3018_s5 + $0x8] sm:$0xff] }
  0xd1   : > { %932 = vmatpush1.bf16.msra.mxu1 %v747_v3 }
  0xd2   : > { %933 = vmatprep.subr.bf16.mxu1 %v2450_v0 }
  0xd3   : > { %v809_v4 = vpop.permute.xlu0 %808 }
  0xd4   : > { %v805_v5 = vpop.permute.xlu1 %804  ;;  %v814_v6 = vsel %vm812_vm8, %v807_v2, %v809_v4 }
  0xd5   : > { %892 = vmatprep.subr.bf16.mxu0 %v814_v6  ;;  %v813_v7 = vsel %vm812_vm8, %v805_v5, %v807_v2 }
  0xd6   : > { %893 = vmatpush1.bf16.msra.mxu0 %v813_v7 }
  0xd7   : > { %v777_v9 = vpop.permute.xlu0 %776 }
  0xd8   : > { %v781_v10 = vsel %vm778_vm7, %v775_v60, %v777_v9  ;;  %v811_v11 = vpop.permute.xlu1 %810 }
  0xd9   : > { %909 = vmatmul.mubr.bf16.vlgmr.msra.gmra.mrb[0].mxu0 %v2392_v8  ;;  %934 = vmatpush1.bf16.msra.mxu1 %v781_v10  ;;  %v815_v12 = vsel %vm812_vm8, %v809_v4, %v811_v11 }
  0xda   : > { %935 = vmatprep.subr.bf16.mxu1 %v2450_v0  ;;  %2232 = vmatprep.mubr.msk.bf16.mxu0 %vm872_vm1, %v2395_v63 }
  0xdd   : > { %936 = vmatpush1.bf16.msra.mxu1 %v815_v12 }
  0xde   : > { %1314 = vmatprep.subr.bf16.mxu1 %v2450_v0 }
  0xe0   : > { %952 = vmatmul.mubr.bf16.vlgmr.msra.gmra.mrb[0].mxu1 %v2392_v8 }
  0xe1   : > { %2233 = vmatprep.mubr.msk.bf16.mxu1 %vm872_vm1, %v2395_v63 }
  0xe8   : > { %v856_v18 = vpop.permute.xlu0 %855 }
  0xe9   : > { %v861_v22 = vpop.permute.xlu1 %860 }
  0xed   : > { %v1021_v9 = vpop.permute.xlu1 %1020 }
  0xf1   : > { %v1046_v16 = vpop.permute.xlu1 %1045 }
 0x1ac   : > { %v910_v20 = vpop.f32.mrb[0].mxu0 }
 0x1ad   : > { %v912_v23 = vpop.f32.mrb[1].mxu0  ;;  %v911_v25 = vadd.f32 %v910_v20, %v856_v18 }
 0x1ae   : > { %v913_v27 = vadd.f32 %v912_v23, %v856_v18  ;;  %v914_v28 = vpop.f32.mrb[2].mxu0 }
 0x1af   : > { %vm961_vm10 = vcmp.ge.f32.partialorder %v911_v25, 0.0  ;;  %v968_v29 = vmul.f32 %v967_v21, %v911_v25  ;;  %v915_v30 = vadd.f32 %v914_v28, %v861_v22  ;;  %v916_v31 = vpop.f32.mrb[3].mxu0 }
 0x1b0   : > { %vm962_vm11 = vcmp.ge.f32.partialorder %v913_v27, 0.0  ;;  %v969_v32 = vmul.f32 %v967_v21, %v913_v27  ;;  %v917_v33 = vadd.f32 %v916_v31, %v861_v22 }
 0x1b1   : > { %v974_v35 = vsel %vm961_vm10, %v911_v25, %v968_v29  ;;  %vm964_vm12 = vcmp.ge.f32.partialorder %v915_v30, 0.0  ;;  %v971_v36 = vmul.f32 %v967_v21, %v915_v30 }
 0x1b2   : > { %v975_v37 = vsel %vm962_vm11, %v913_v27, %v969_v32  ;;  %v2721_v38 = vmul.f32 %v2716_v26, %v974_v35  ;;  %vm965_vm13 = vcmp.ge.f32.partialorder %v917_v33, 0.0  ;;  %v972_v39 = vmul.f32 %v967_v21, %v917_v33 }
 0x1b3   : > { %v977_v40 = vsel %vm964_vm12, %v915_v30, %v971_v36  ;;  %v953_v41 = vpop.f32.mrb[0].mxu1  ;;  %v2727_v47 = vmul.f32 %v2718_v34, %v975_v37  ;;  %vm2460_vm11 = vmmov 0   ;;  %vm1476_vm12 = vcmask 261120  }
 0x1b4   : > { %v2724_v43 = vmul.f32 %v2716_v26, %v977_v40  ;;  %v978_v44 = vsel %vm965_vm13, %v917_v33, %v972_v39  ;;  %v954_v45 = vadd.f32 %v953_v41, %v856_v18  ;;  %v955_v46 = vpop.f32.mrb[1].mxu1  ;;  %v1402_v11 = vmul.f32 %v2721_v38, %v2721_v38  ;;  %v1071_v18 = vpop.permute.xlu1 %1070 }
 0x1b5   : > { %v2730_v48 = vmul.f32 %v2718_v34, %v978_v44  ;;  %v956_v49 = vpop.f32.mrb[2].mxu1  ;;  %v1381_v2 = vadd.f32 %v2727_v47, %v2721_v38  ;;  %v1403_v12 = vmul.f32 %v2727_v47, %v2727_v47 }
 0x1b6   : > { %v2734_v50 = vpack.c.bf16 %v2724_v43, %v2721_v38  ;;  %vm963_vm14 = vcmp.ge.f32.partialorder %v954_v45, 0.0  ;;  %v970_v51 = vmul.f32 %v967_v21, %v954_v45  ;;  %v957_v52 = vadd.f32 %v956_v49, %v861_v22  ;;  %v958_v53 = vpop.f32.mrb[3].mxu1 }
 0x1b7   : > { %v2738_v54 = vpack.c.bf16 %v2730_v48, %v2727_v47  ;;  %v1405_v3 = vmul.f32 %v2724_v43, %v2724_v43  ;;  %v1406_v4 = vmul.f32 %v2730_v48, %v2730_v48  ;;  %v1385_v10 = vadd.f32 %v2730_v48, %v2724_v43 }
 0x1b8   : > { %v976_v56 = vsel %vm963_vm14, %v954_v45, %v970_v51  ;;  %vm966_vm15 = vcmp.ge.f32.partialorder %v957_v52, 0.0  ;;  %v973_v57 = vmul.f32 %v967_v21, %v957_v52  ;;  %1022 = vrot.lane.b32.xlu1 %v2734_v50, %s2451_s19  ;;  %v1408_v15 = vadd.f32 %v1403_v12, %v1402_v11  ;;  %v1096_v19 = vpop.permute.xlu1 %1095  ;;  %v1133_v21 = vpop.permute.xlu0 %1132 }
 0x1b9   : > { %v2745_v59 = vmul.f32 %v2740_v55, %v976_v56  ;;  %v1412_v7 = vadd.f32 %v1406_v4, %v1405_v3 }
 0x1ba   : > { %v979_v58 = vsel %vm966_vm15, %v957_v52, %v973_v57 }
 0x1bb   : > { %v2748_v60 = vmul.f32 %v2740_v55, %v979_v58  ;;  %v1382_v5 = vadd.f32 %v1381_v2, %v2745_v59 }
 0x1bc   : > { %1047 = vrot.lane.b32.xlu1 %v2734_v50, %s2452_s20 }
 0x1bd   : > { %v2754_v61 = vpack.c.bf16 %v2748_v60, %v2745_v59  ;;  %v1407_v6 = vmul.f32 %v2748_v60, %v2748_v60  ;;  %v1386_v13 = vadd.f32 %v1385_v10, %v2748_v60 }
 0x1bf   : > { %1026 = vrot.lane.b32.xlu0 %v2754_v61, %s2451_s19  ;;  %v1413_v8 = vadd.f32 %v1412_v7, %v1407_v6 }
 0x1c0   : > { %1072 = vrot.lane.b32.xlu1 %v2734_v50, %s2453_s23 }
 0x1c3   : > { %1051 = vrot.lane.b32.xlu0 %v2754_v61, %s2452_s20 }
 0x1c4   : > { %1097 = vrot.lane.b32.xlu1 %v2734_v50, %s2454_s24 }
 0x1c7   : > { %1076 = vrot.lane.b32.xlu0 %v2754_v61, %s2453_s23 }
 0x1c8   : > { %1126 = vrot.lane.b32.xlu1 %v2734_v50, %s2455_s25 }
 0x1cb   : > { %1101 = vrot.lane.b32.xlu0 %v2754_v61, %s2454_s24 }
 0x1cc   : > { %1151 = vrot.lane.b32.xlu1 %v2734_v50, %s2456_s26 }
 0x1cf   : > { %1130 = vrot.lane.b32.xlu0 %v2754_v61, %s2455_s25 }
 0x1d0   : > { %1176 = vrot.lane.b32.xlu1 %v2734_v50, %s2457_s27 }
 0x1d3   : > { %1024 = vrot.lane.b32.xlu0 %v2738_v54, %s2451_s19  ;;  %s535_s19 = scalar_lea.vmem %s3029_s16, %s2358_s28 }
 0x1d4   : > { %1128 = vrot.lane.b32.xlu1 %v2738_v54, %s2455_s25 }
 0x1d7   : > { %1049 = vrot.lane.b32.xlu0 %v2738_v54, %s2452_s20 }
 0x1d8   : > { %1153 = vrot.lane.b32.xlu1 %v2738_v54, %s2456_s26 }
 0x1db   : > { %1074 = vrot.lane.b32.xlu0 %v2738_v54, %s2453_s23 }
 0x1dc   : > { %1178 = vrot.lane.b32.xlu1 %v2738_v54, %s2457_s27 }
 0x1df   : > { %1099 = vrot.lane.b32.xlu0 %v2738_v54, %s2454_s24 }
 0x1e0   : > { %1203 = vrot.lane.b32.xlu1 %v2738_v54, %s2458_s30 }
 0x1e3   : > { %1155 = vrot.lane.b32.xlu0 %v2754_v61, %s2456_s26 }
 0x1e4   : > { %1201 = vrot.lane.b32.xlu1 %v2734_v50, %s2458_s30 }
 0x1e7   : > { %1157 = vrot.lane.b32.xlu0 %v2709_v14, %s2456_s26 }
 0x1e8   : > { %1251 = vperm.xlu1 %2391, %v1247_v62  }
 0x1eb   : > { %1180 = vrot.lane.b32.xlu0 %v2754_v61, %s2457_s27 }
 0x1ef   : > { %1182 = vrot.lane.b32.xlu0 %v2709_v14, %s2457_s27 }
 0x1f3   : > { %1205 = vrot.lane.b32.xlu0 %v2754_v61, %s2458_s30 }
 0x1f7   : > { %1207 = vrot.lane.b32.xlu0 %v2709_v14, %s2458_s30  ;;  %v1404_v14 = vmul.f32 %v2745_v59, %v2745_v59 }
 0x1f9   : > { %v1409_v17 = vadd.f32 %v1408_v15, %v1404_v14 }
 0x1fb   : > { %1256 = vperm.xlu0 %2390, %v1248_v1  }
 0x20c   : > { %1383 = vadd.xlane.f32.xlu1 %v1382_v5 }
 0x210   : > { %1414 = vadd.xlane.f32.xlu1 %v1413_v8 }
 0x21a   : > { %1387 = vadd.xlane.f32.xlu0 %v1386_v13 }
 0x21e   : > { %1410 = vadd.xlane.f32.xlu0 %v1409_v17 }
 0x22a   : > { %v1023_v20 = vpop.permute.xlu1 %1022 }
 0x22b   : > { %v1028_v39 = vsel %vm562_vm0, %v1021_v9, %v1023_v20 }
 0x22e   : > { %v1048_v22 = vpop.permute.xlu1 %1047 }
 0x22f   : > { %v1053_v44 = vsel %vm596_vm2, %v1046_v16, %v1048_v22  ;;  %v2397_v16 = vld [vmem:[%s3017_s4] ss:$8 sps:$4 sm:$0xff]  }
 0x231   : > { %v1027_v23 = vpop.permute.xlu0 %1026 }
 0x232   : > { %v1073_v24 = vpop.permute.xlu1 %1072 }
 0x233   : > { %v1078_v52 = vsel %vm630_vm3, %v1071_v18, %v1073_v24  ;;  %v2459_v18 = vmov 0.0|0.0  }
 0x235   : > { %v1052_v25 = vpop.permute.xlu0 %1051 }
 0x236   : > { %v1098_v27 = vpop.permute.xlu1 %1097 }
 0x237   : > { %v1103_v62 = vsel %vm664_vm4, %v1096_v19, %v1098_v27 }
 0x239   : > { %v1077_v28 = vpop.permute.xlu0 %1076 }
 0x23a   : > { %v1127_v29 = vpop.permute.xlu1 %1126 }
 0x23d   : > { %v1102_v30 = vpop.permute.xlu0 %1101 }
 0x23e   : > { %v1152_v31 = vpop.permute.xlu1 %1151 }
 0x241   : > { %v1131_v32 = vpop.permute.xlu0 %1130 }
 0x242   : > { %v1177_v35 = vpop.permute.xlu1 %1176  ;;  %v1136_v4 = vsel %vm710_vm5, %v1131_v32, %v1133_v21 }
 0x245   : > { %v1025_v33 = vpop.permute.xlu0 %1024 }
 0x246   : > { %v1030_v36 = vsel %vm562_vm0, %v1025_v33, %v1027_v23  ;;  %v1029_v37 = vsel %vm562_vm0, %v1023_v20, %v1025_v33  ;;  %v1129_v45 = vpop.permute.xlu1 %1128 }
 0x247   : > { %1271 = vmatprep.subr.bf16.mxu0 %v1029_v37  ;;  %1315 = vmatpush1.bf16.msra.mxu1 %v1030_v36  ;;  %v1135_v2 = vsel %vm710_vm5, %v1129_v45, %v1131_v32  ;;  %v1134_v5 = vsel %vm710_vm5, %v1127_v29, %v1129_v45 }
 0x248   : > { %1272 = vmatpush1.bf16.msra.mxu0 %v1028_v39  ;;  %1316 = vmatprep.subr.bf16.mxu1 %v2450_v0 }
 0x249   : > { %v1050_v40 = vpop.permute.xlu0 %1049 }
 0x24a   : > { %v1055_v41 = vsel %vm596_vm2, %v1050_v40, %v1052_v25  ;;  %v1054_v42 = vsel %vm596_vm2, %v1048_v22, %v1050_v40  ;;  %v1154_v56 = vpop.permute.xlu1 %1153 }
 0x24b   : > { %1273 = vmatprep.subr.bf16.mxu0 %v1054_v42  ;;  %1317 = vmatpush1.bf16.msra.mxu1 %v1055_v41  ;;  %v1159_v7 = vsel %vm744_vm6, %v1152_v31, %v1154_v56 }
 0x24c   : > { %1274 = vmatpush1.bf16.msra.mxu0 %v1053_v44  ;;  %1318 = vmatprep.subr.bf16.mxu1 %v2450_v0 }
 0x24d   : > { %v1075_v46 = vpop.permute.xlu0 %1074 }
 0x24e   : > { %v1080_v49 = vsel %vm630_vm3, %v1075_v46, %v1077_v28  ;;  %v1079_v51 = vsel %vm630_vm3, %v1073_v24, %v1075_v46  ;;  %v1179_v1 = vpop.permute.xlu1 %1178 }
 0x24f   : > { %1275 = vmatprep.subr.bf16.mxu0 %v1079_v51  ;;  %1319 = vmatpush1.bf16.msra.mxu1 %v1080_v49  ;;  %v1184_v11 = vsel %vm778_vm7, %v1177_v35, %v1179_v1 }
 0x250   : > { %1276 = vmatpush1.bf16.msra.mxu0 %v1078_v52  ;;  %1320 = vmatprep.subr.bf16.mxu1 %v2450_v0 }
 0x251   : > { %v1100_v53 = vpop.permute.xlu0 %1099 }
 0x252   : > { %v1105_v57 = vsel %vm664_vm4, %v1100_v53, %v1102_v30  ;;  %v1104_v58 = vsel %vm664_vm4, %v1098_v27, %v1100_v53 }
 0x253   : > { %1277 = vmatprep.subr.bf16.mxu0 %v1104_v58  ;;  %1321 = vmatpush1.bf16.msra.mxu1 %v1105_v57  ;;  %v1362_v57 = vstv %s2234_s17 }
 0x254   : > { %1278 = vmatpush1.bf16.msra.mxu0 %v1103_v62  ;;  %1322 = vmatprep.subr.bf16.mxu1 %v2450_v0 }
 0x255   : > { %v1156_v63 = vpop.permute.xlu0 %1155  ;;  %1279 = vmatprep.subr.bf16.mxu0 %v2738_v54 }
 0x256   : > { %v1160_v6 = vsel %vm744_vm6, %v1154_v56, %v1156_v63 }
 0x257   : > { %1323 = vmatpush1.bf16.msra.mxu1 %v2754_v61  ;;  %v1204_v61 = vpop.permute.xlu1 %1203 }
 0x258   : > { %1280 = vmatpush1.bf16.msra.mxu0 %v2734_v50  ;;  %1324 = vmatprep.subr.bf16.mxu1 %v2450_v0 }
 0x259   : > { %v1158_v3 = vpop.permute.xlu0 %1157  ;;  %1281 = vmatprep.subr.bf16.mxu0 %v1135_v2 }
 0x25a   : > { %v1161_v50 = vsel %vm744_vm6, %v1156_v63, %v1158_v3 }
 0x25b   : > { %1325 = vmatpush1.bf16.msra.mxu1 %v1136_v4  ;;  %v1202_v12 = vpop.permute.xlu1 %1201 }
 0x25c   : > { %1282 = vmatpush1.bf16.msra.mxu0 %v1134_v5  ;;  %1326 = vmatprep.subr.bf16.mxu1 %v2450_v0  ;;  %v1209_v15 = vsel %vm812_vm8, %v1202_v12, %v1204_v61 }
 0x25d   : > { %v1181_v54 = vpop.permute.xlu0 %1180  ;;  %1283 = vmatprep.subr.bf16.mxu0 %v1160_v6 }
 0x25e   : > { %v1185_v8 = vsel %vm778_vm7, %v1179_v1, %v1181_v54 }
 0x25f   : > { %1327 = vmatpush1.bf16.msra.mxu1 %v1161_v50 }
 0x260   : > { %1284 = vmatpush1.bf16.msra.mxu0 %v1159_v7  ;;  %1328 = vmatprep.subr.bf16.mxu1 %v2450_v0 }
 0x261   : > { %v1183_v9 = vpop.permute.xlu0 %1182  ;;  %1285 = vmatprep.subr.bf16.mxu0 %v1185_v8 }
 0x262   : > { %v1186_v10 = vsel %vm778_vm7, %v1181_v54, %v1183_v9 }
 0x263   : > { %1329 = vmatpush1.bf16.msra.mxu1 %v1186_v10 }
 0x264   : > { %1286 = vmatpush1.bf16.msra.mxu0 %v1184_v11  ;;  %1330 = vmatprep.subr.bf16.mxu1 %v2450_v0 }
 0x265   : > { %v1206_v13 = vpop.permute.xlu0 %1205 }
 0x266   : > { %v1210_v14 = vsel %vm812_vm8, %v1204_v61, %v1206_v13 }
 0x267   : > { %1287 = vmatprep.subr.bf16.mxu0 %v1210_v14  ;;  %v1252_v0 = vpop.permute.xlu1 %1251 }
 0x268   : > { %1288 = vmatpush1.bf16.msra.mxu0 %v1209_v15 }
 0x269   : > { %v1208_v17 = vpop.permute.xlu0 %1207  ;;  %2323 = vmatprep.subr.bf16.mxu0 %v2459_v18 }
 0x26a   : > { %v1211_v19 = vsel %vm812_vm8, %v1206_v13, %v1208_v17 }
 0x26b   : > { %1304 = vmatmul.mubr.bf16.vlgmr.msra.gmra.mrb[4].mxu0 %v2397_v16  ;;  %1331 = vmatpush1.bf16.msra.mxu1 %v1211_v19 }
 0x26c   : > { %2329 = vmatprep.subr.bf16.mxu1 %v2459_v18 }
 0x26e   : > { %1347 = vmatmul.mubr.bf16.vlgmr.msra.gmra.mrb[4].mxu1 %v2397_v16 }
 0x27a   : > { %v2873_v21 = vpop.permute.xlu0 %1256 }
 0x299   : > { %v1384_v20 = vpop.xlane.xlu1 %1383 }
 0x29a   : > { %v1390_v24 = vmul.f32 0.00390625, %v1384_v20 }
 0x29c   : > { %v1418_v31 = vmul.f32 %v1390_v24, %v1390_v24 }
 0x29d   : > { %v1415_v22 = vpop.xlane.xlu1 %1414 }
 0x29e   : > { %v1417_v27 = vmul.f32 0.00390625, %v1415_v22 }
 0x2a7   : > { %v1388_v23 = vpop.xlane.xlu0 %1387 }
 0x2a8   : > { %v1391_v25 = vmul.f32 0.00390625, %v1388_v23 }
 0x2aa   : > { %v1419_v28 = vmul.f32 %v1391_v25, %v1391_v25  ;;  %v2324_v29 = vpack.c.bf16 %v1391_v25, %v1390_v24 }
 0x2ab   : > { %v1411_v30 = vpop.xlane.xlu0 %1410 }
 0x2ac   : > { %v1421_v32 = vsub.f32 %v1417_v27, %v1419_v28  ;;  %v1416_v33 = vmul.f32 0.00390625, %v1411_v30  ;;  %2325 = vmatpush3.bf16.msra.mxu0 %v2324_v29 }
 0x2ad   : > { %2326 = vmatprep.subr.bf16.mxu0 %v2459_v18 }
 0x2ae   : > { %v1423_v35 = vmax.f32 %v1421_v32, 0.0  ;;  %v1420_v36 = vsub.f32 %v1416_v33, %v1418_v31 }
 0x2b0   : > { %2398 = vrsqrt.f32 %v1423_v35  ;;  %v1422_v37 = vmax.f32 %v1420_v36, 0.0  ;;  %vm1455_vm0 = vcmp.eq.f32.partialorder %v1423_v35, inf  ;;  %v1458_v46 = vand.u32 2147483648, %v1423_v35 }
 0x2b1   : > { %vm1457_vm4 = vcmp.eq.f32.partialorder %v1423_v35, 0.0 }
 0x2b2   : > { %2400 = vrsqrt.f32 %v1422_v37  ;;  %vm1448_vm2 = vcmp.eq.f32.partialorder %v1422_v37, inf  ;;  %v1451_v45 = vand.u32 2147483648, %v1422_v37  ;;  %vm1450_vm3 = vcmp.eq.f32.partialorder %v1422_v37, 0.0 }
 0x2ba   : > { %v2399_v39 = vpop.eup %2398 }
 0x2bb   : > { %v1454_v40 = vmul.f32 %v2399_v39, %v1423_v35 }
 0x2bc   : > { %v2401_v41 = vpop.eup %2400 }
 0x2bd   : > { %v1447_v42 = vmul.f32 %v2401_v41, %v1422_v37  ;;  %v1456_v44 = vsel %vm1455_vm0, %v1423_v35, %v1454_v40  ;;  %v2461_v40 = vmov 0.0  }
 0x2be   : > { %v1459_v52 = vsel %vm1457_vm4, %v1458_v46, %v1456_v44  ;;  %2287 = vmatprep.mubr.msk.f32.mxu0 %vm2460_vm11, %v2461_v40  ;;  %2298 = vmatprep.mubr.msk.f32.mxu1 %vm2460_vm11, %v2461_v40 }
 0x2bf   : > { %v1449_v49 = vsel %vm1448_vm2, %v1422_v37, %v1447_v42  ;;  %vm1636_vm2 = vcmask 15360  }
 0x2c0   : > { %v1452_v51 = vsel %vm1450_vm3, %v1451_v45, %v1449_v49  ;;  %vm1649_vm3 = vcmask 1041408  }
 0x2c1   : > { %v2330_v53 = vpack.c.bf16 %v1459_v52, %v1452_v51 }
 0x2c3   : > { %2331 = vmatpush3.bf16.msra.mxu1 %v2330_v53 }
 0x2c4   : > { %2332 = vmatprep.subr.bf16.mxu1 %v2459_v18 }
 0x33e   : > { %v1305_v56 = vpop.f32.mrb[4].mxu0 }
 0x33f   : > { %v1306_v58 = vadd.f32 %v1305_v56, %v1252_v0  ;;  %v1307_v62 = vpop.f32.mrb[5].mxu0 }
 0x340   : > { %v1308_v63 = vadd.f32 %v1307_v62, %v1252_v0  ;;  %v1309_v1 = vpop.f32.mrb[6].mxu0 }
 0x341   : > { %vm1356_vm5 = vcmp.ge.f32.partialorder %v1306_v58, 0.0  ;;  %v1363_v2 = vmul.f32 %v1362_v57, %v1306_v58  ;;  %v1310_v3 = vadd.f32 %v1309_v1, %v2873_v21  ;;  %v1311_v4 = vpop.f32.mrb[7].mxu0  ;;  %v1348_v5 = vpop.f32.mrb[4].mxu1 }
 0x342   : > { %vm1357_vm6 = vcmp.ge.f32.partialorder %v1308_v63, 0.0  ;;  %v1364_v6 = vmul.f32 %v1362_v57, %v1308_v63  ;;  %v1312_v54 = vadd.f32 %v1311_v4, %v2873_v21  ;;  %v1349_v61 = vadd.f32 %v1348_v5, %v1252_v0  ;;  %v1350_v50 = vpop.f32.mrb[5].mxu1 }
 0x343   : > { %v1369_v7 = vsel %vm1356_vm5, %v1306_v58, %v1363_v2  ;;  %vm1359_vm7 = vcmp.ge.f32.partialorder %v1310_v3, 0.0  ;;  %v1366_v8 = vmul.f32 %v1362_v57, %v1310_v3  ;;  %v1351_v9 = vpop.f32.mrb[6].mxu1  ;;  %v1474_v58 = vld [vmem:[%s3019_s6] sm:$0x3] }
 0x344   : > { %v2878_v10 = vmul.f32 %v1369_v7, %v2716_v26  ;;  %v1370_v11 = vsel %vm1357_vm6, %v1308_v63, %v1364_v6  ;;  %vm1360_vm8 = vcmp.ge.f32.partialorder %v1312_v54, 0.0  ;;  %v1367_v12 = vmul.f32 %v1362_v57, %v1312_v54  ;;  %v1353_v13 = vpop.f32.mrb[7].mxu1 }
 0x345   : > { %v2881_v14 = vmul.f32 %v1370_v11, %v2718_v34  ;;  %v1372_v15 = vsel %vm1359_vm7, %v1310_v3, %v1366_v8  ;;  %vm1358_vm9 = vcmp.ge.f32.partialorder %v1349_v61, 0.0  ;;  %v1365_v16 = vmul.f32 %v1362_v57, %v1349_v61  ;;  %v1551_v11 = vld [vmem:[%s3021_s8] sm:$0x3] }
 0x346   : > { %v2884_v17 = vmul.f32 %v1372_v15, %v2716_v26  ;;  %v1373_v18 = vsel %vm1360_vm8, %v1312_v54, %v1367_v12  ;;  %v1352_v19 = vadd.f32 %v1351_v9, %v2873_v21  ;;  %v1424_v0 = vmul.f32 %v2878_v10, %v2878_v10  ;;  %v1627_v12 = vld [vmem:[%s3023_s10] sm:$0xff] }
 0x347   : > { %v2890_v20 = vmul.f32 %v1373_v18, %v2718_v34  ;;  %v1371_v22 = vsel %vm1358_vm9, %v1349_v61, %v1365_v16  ;;  %v1392_v23 = vadd.f32 %v2881_v14, %v2878_v10  ;;  %v1425_v24 = vmul.f32 %v2881_v14, %v2881_v14  ;;  %v1475_v16 = vld [vmem:[%s3020_s7] sm:$0x3] }
 0x348   : > { %vm1361_vm10 = vcmp.ge.f32.partialorder %v1352_v19, 0.0  ;;  %v1368_v25 = vmul.f32 %v1362_v57, %v1352_v19  ;;  %v2897_v26 = vmul.f32 %v1371_v22, %v2740_v55  ;;  %v1427_v27 = vmul.f32 %v2884_v17, %v2884_v17 }
 0x349   : > { %v1396_v21 = vadd.f32 %v2890_v20, %v2884_v17  ;;  %v1428_v34 = vmul.f32 %v2890_v20, %v2890_v20  ;;  %v1430_v31 = vadd.f32 %v1425_v24, %v1424_v0 }
 0x34a   : > { %v1374_v28 = vsel %vm1361_vm10, %v1352_v19, %v1368_v25  ;;  %v1393_v29 = vadd.f32 %v1392_v23, %v2897_v26  ;;  %v1426_v30 = vmul.f32 %v2897_v26, %v2897_v26  ;;  %v1552_v19 = vld [vmem:[%s3022_s9] sm:$0x3] }
 0x34b   : > { %v2909_v32 = vmul.f32 %v1374_v28, %v2740_v55  ;;  %v1434_v36 = vadd.f32 %v1428_v34, %v1427_v27  ;;  %v1628_v27 = vld [vmem:[%s3023_s10 + $0x8] sm:$0xff]  ;;  %v1629_v34 = vld [vmem:[%s3023_s10 + $0x10] sm:$0xff]  ;;  %v1630_v28 = vld [vmem:[%s3023_s10 + $0x18] sm:$0xff] }
 0x34c   : > { %1394 = vadd.xlane.f32.xlu0 %v1393_v29  ;;  %v1431_v37 = vadd.f32 %v1430_v31, %v1426_v30  ;;  %v1633_v29 = vld [vmem:[%s3024_s11 + $0x8] sm:$0xff]  ;;  %v1632_v30 = vld [vmem:[%s3024_s11] sm:$0xff] }
 0x34d   : > { %v1397_v33 = vadd.f32 %v1396_v21, %v2909_v32  ;;  %v1429_v35 = vmul.f32 %v2909_v32, %v2909_v32 }
 0x34f   : > { %1398 = vadd.xlane.f32.xlu1 %v1397_v33  ;;  %v1435_v39 = vadd.f32 %v1434_v36, %v1429_v35 }
 0x350   : > { %1432 = vadd.xlane.f32.xlu0 %v1431_v37  ;;  %v1635_v37 = vld [vmem:[%s3024_s11 + $0x18] sm:$0xff] }
 0x353   : > { %1436 = vadd.xlane.f32.xlu1 %v1435_v39 }
 0x3d9   : > { %v1395_v55 = vpop.xlane.xlu0 %1394 }
 0x3da   : > { %v1400_v41 = vmul.f32 0.00390625, %v1395_v55  ;;  %v1634_v55 = vld [vmem:[%s3024_s11 + $0x10] sm:$0xff] }
 0x3dc   : > { %v1399_v42 = vpop.xlane.xlu1 %1398  ;;  %v1440_v46 = vmul.f32 %v1400_v41, %v1400_v41 }
 0x3dd   : > { %v1401_v44 = vmul.f32 0.00390625, %v1399_v42  ;;  %v1433_v45 = vpop.xlane.xlu0 %1432 }
 0x3de   : > { %v1438_v49 = vmul.f32 0.00390625, %v1433_v45 }
 0x3df   : > { %v2327_v51 = vpack.c.bf16 %v1401_v44, %v1400_v41  ;;  %v1441_v56 = vmul.f32 %v1401_v44, %v1401_v44 }
 0x3e0   : > { %v1442_v52 = vsub.f32 %v1438_v49, %v1440_v46  ;;  %v1437_v53 = vpop.xlane.xlu1 %1436 }
 0x3e1   : > { %v1439_v57 = vmul.f32 0.00390625, %v1437_v53  ;;  %2328 = vmatpush3.bf16.msra.mxu0 %v2327_v51 }
 0x3e2   : > { %v1444_v62 = vmax.f32 %v1442_v52, 0.0 }
 0x3e3   : > { %v1443_v63 = vsub.f32 %v1439_v57, %v1441_v56 }
 0x3e4   : > { %2402 = vrsqrt.f32 %v1444_v62  ;;  %2288 = vmatmul.mubr.msk.f32.vlgmr.msra.gmra.mrb[8].mxu0 %vm1476_vm12, %v1474_v58  ;;  %vm1462_vm13 = vcmp.eq.f32.partialorder %v1444_v62, inf  ;;  %v1465_v54 = vand.u32 2147483648, %v1444_v62  ;;  %vm1464_vm15 = vcmp.eq.f32.partialorder %v1444_v62, 0.0 }
 0x3e5   : > { %v1445_v1 = vmax.f32 %v1443_v63, 0.0  ;;  %2303 = vmatprep.mubr.msk.f32.mxu0 %vm1636_vm2, %v1627_v12 }
 0x3e7   : > { %2404 = vrsqrt.f32 %v1445_v1  ;;  %vm1469_vm14 = vcmp.eq.f32.partialorder %v1445_v1, inf  ;;  %v1472_v61 = vand.u32 2147483648, %v1445_v1  ;;  %vm1471_vm0 = vcmp.eq.f32.partialorder %v1445_v1, 0.0 }
 0x3ee   : > { %v2403_v2 = vpop.eup %2402 }
 0x3ef   : > { %v1461_v3 = vmul.f32 %v2403_v2, %v1444_v62 }
 0x3f1   : > { %v2405_v4 = vpop.eup %2404  ;;  %v1463_v5 = vsel %vm1462_vm13, %v1444_v62, %v1461_v3 }
 0x3f2   : > { %v1468_v6 = vmul.f32 %v2405_v4, %v1445_v1  ;;  %v1466_v7 = vsel %vm1464_vm15, %v1465_v54, %v1463_v5  ;;  %v2115_v54 = vld [vmem:[%s3027_s14 + $0x8] sm:$0xff] }
 0x3f4   : > { %v1470_v50 = vsel %vm1469_vm14, %v1445_v1, %v1468_v6  ;;  %v2114_v6 = vld [vmem:[%s3027_s14] sm:$0xff] }
 0x3f5   : > { %v1473_v8 = vsel %vm1471_vm0, %v1472_v61, %v1470_v50  ;;  %v1796_v61 = vld [vmem:[%s3026_s13] sm:$0xff] }
 0x3f6   : > { %v2333_v9 = vpack.c.bf16 %v1473_v8, %v1466_v7 }
 0x3f8   : > { %2334 = vmatpush3.bf16.msra.mxu1 %v2333_v9 }
 0x3fb   : > { %2299 = vmatmul.mubr.msk.f32.vlgmr.msra.gmra.mrb[8].mxu1 %vm1476_vm12, %v1551_v11 }
 0x3fc   : > { %1868 = vmatprep.mubr.f32.mxu1 %v2461_v40 }
 0x4b7   : > { %v1546_v13 = vpop.f32.mrb[8].mxu0 }
 0x4b8   : > { %v2289_v15 = vpop.f32.mrb[9].mxu0  ;;  %v1547_v18 = vadd.f32 %v1546_v13, %v1475_v16 }
 0x4ba   : > { %v1550_v22 = vmax.f32 %v1547_v18, 0.0 }
 0x4ce   : > { %v1622_v0 = vpop.f32.mrb[8].mxu1 }
 0x4cf   : > { %v1623_v23 = vadd.f32 %v1622_v0, %v1552_v19  ;;  %v2300_v24 = vpop.f32.mrb[9].mxu1 }
 0x4d1   : > { %v1626_v25 = vmax.f32 %v1623_v23, 0.0 }
 0x4d3   : > { %v1631_v21 = vadd.f32 %v1626_v25, %v1550_v22 }
 0x4d5   : > { %2301 = vmatprep.subr.msk.mxu0 %vm1649_vm3, %v1631_v21 }
 0x4d6   : > { %2302 = vmatpush3.msk.msra.mxu0 %vm1649_vm3, %v1631_v21  ;;  %v2132_v21 = vld [vmem:[%s2580_s18 + $0x8] sm:$0xff] }
 0x4d7   : > { %2304 = vmatmul.mubr.msk.f32.vlgmr.msra.gmra.mrb[10].mxu0 %vm1636_vm2, %v1628_v27 }
 0x4d8   : > { %2306 = vmatprep.mubr.msk.f32.mxu0 %vm1636_vm2, %v1629_v34  ;;  %v2137_v34 = vld [vmem:[%s2580_s18 + $0x40] sm:$0xff] }
 0x4db   : > { %2307 = vmatmul.mubr.msk.f32.gmra.mrb[12].mxu0 %vm1636_vm2, %v1630_v28 }
 0x4dc   : > { %2313 = vmatprep.mubr.msk.f32.mxu0 %vm872_vm1, %v1796_v61 }
 0x5aa   : > { %v2305_v31 = vpop.f32.mrb[10].mxu0 }
 0x5ab   : > { %v1725_v33 = vadd.f32 %v2305_v31, %v1633_v29  ;;  %v1719_v35 = vpop.f32.mrb[11].mxu0  ;;  %v2133_v31 = vld [vmem:[%s2580_s18 + $0x10] sm:$0xff] }
 0x5ac   : > { %v1720_v36 = vadd.f32 %v1719_v35, %v1632_v30  ;;  %v2134_v35 = vld [vmem:[%s2580_s18 + $0x18] sm:$0xff] }
 0x5ad   : > { %v2243_v39 = vmul.f32 -1.442695, %v1725_v33 }
 0x5ae   : > { %v2242_v41 = vmul.f32 -1.442695, %v1720_v36  ;;  %v2308_v42 = vpop.f32.mrb[12].mxu0 }
 0x5af   : > { %v1735_v44 = vadd.f32 %v2308_v42, %v1635_v37  ;;  %v1729_v45 = vpop.f32.mrb[13].mxu0  ;;  %2406 = vpow2.f32 %v2243_v39 }
 0x5b0   : > { %v1730_v46 = vadd.f32 %v1729_v45, %v1634_v55  ;;  %2408 = vpow2.f32 %v2242_v41 }
 0x5b1   : > { %v2245_v49 = vmul.f32 -1.442695, %v1735_v44  ;;  %v2135_v44 = vld [vmem:[%s2580_s18 + $0x30] sm:$0xff] }
 0x5b2   : > { %v2244_v51 = vmul.f32 -1.442695, %v1730_v46 }
 0x5b3   : > { %2410 = vpow2.f32 %v2245_v49  ;;  %v2136_v49 = vld [vmem:[%s2580_s18 + $0x38] sm:$0xff] }
 0x5b4   : > { %2412 = vpow2.f32 %v2244_v51 }
 0x5b9   : > { %v2407_v52 = vpop.eup %2406 }
 0x5ba   : > { %v2409_v53 = vpop.eup %2408  ;;  %v1751_v1 = vadd.f32 1.0, %v2407_v52 }
 0x5bb   : > { %v1750_v63 = vadd.f32 1.0, %v2409_v53 }
 0x5bd   : > { %v2411_v56 = vpop.eup %2410 }
 0x5be   : > { %v2413_v57 = vpop.eup %2412  ;;  %v1753_v58 = vadd.f32 1.0, %v2411_v56 }
 0x5bf   : > { %v1752_v62 = vadd.f32 1.0, %v2413_v57 }
 0x5c0   : > { %2414 = vrcp.f32 %v1753_v58 }
 0x5c1   : > { %2416 = vrcp.f32 %v1752_v62 }
 0x5c2   : > { %2418 = vrcp.f32 %v1750_v63 }
 0x5c3   : > { %2420 = vrcp.f32 %v1751_v1 }
 0x5ca   : > { %v2415_v2 = vpop.eup %2414 }
 0x5cb   : > { %v2417_v3 = vpop.eup %2416  ;;  %1785 = vperm.xlu1 %2391, %v2415_v2  }
 0x5cc   : > { %1780 = vperm.xlu0 %2390, %v2417_v3   ;;  %v2419_v4 = vpop.eup %2418 }
 0x5cd   : > { %v2421_v5 = vpop.eup %2420 }
 0x5cf   : > { %1764 = vperm.xlu1 %2391, %v2419_v4  }
 0x5d0   : > { %1769 = vperm.xlu0 %2390, %v2421_v5  }
 0x5d3   : > { %2118 = vperm.xlu1 %2391, %v2114_v6  }
 0x5d4   : > { %2123 = vperm.xlu0 %2390, %v2115_v54  }
 0x64a   : > { %v1786_v50 = vpop.permute.xlu1 %1785 }
 0x64b   : > { %v1791_v7 = vmul.f32 %v1786_v50, %v2884_v17  ;;  %v1792_v8 = vmul.f32 %v1786_v50, %v2890_v20  ;;  %v1793_v9 = vmul.f32 %v1786_v50, %v2909_v32  ;;  %v1781_v11 = vpop.permute.xlu0 %1780 }
 0x64c   : > { %v1788_v12 = vmul.f32 %v1781_v11, %v2878_v10  ;;  %v1789_v13 = vmul.f32 %v1781_v11, %v2881_v14  ;;  %v1790_v15 = vmul.f32 %v1781_v11, %v2897_v26  ;;  %v1797_v14 = vld [vmem:[%s3026_s13 + $0x8] sm:$0xff] }
 0x64e   : > { %v2337_v16 = vpack.c.bf16 %v1791_v7, %v1788_v12  ;;  %v1765_v18 = vpop.permute.xlu1 %1764  ;;  %v2335_v19 = vpack.c.bf16 %v1792_v8, %v1789_v13  ;;  %v2339_v0 = vpack.c.bf16 %v1793_v9, %v1790_v15 }
 0x64f   : > { %v1772_v22 = vmul.f32 %v1765_v18, %v2721_v38  ;;  %v1773_v23 = vmul.f32 %v1765_v18, %v2727_v47  ;;  %v1774_v17 = vmul.f32 %v1765_v18, %v2745_v59  ;;  %v1770_v20 = vpop.permute.xlu0 %1769 }
 0x650   : > { %v1775_v32 = vmul.f32 %v1770_v20, %v2724_v43  ;;  %v1776_v24 = vmul.f32 %v1770_v20, %v2730_v48  ;;  %v1777_v10 = vmul.f32 %v1770_v20, %v2748_v60  ;;  %2336 = vmatprep.subr.bf16.mxu1 %v2335_v19  ;;  %2340 = vmatprep.subr.bf16.mxu0 %v2339_v0  ;;  %v1794_v43 = vld [vmem:[%s3025_s12] sm:$0xff]  ;;  %v1795_v48 = vld [vmem:[%s3025_s12 + $0x8] sm:$0xff] }
 0x651   : > { %2338 = vmatpush1.bf16.msra.mxu1 %v2337_v16  ;;  %2342 = vmatpush3.bf16.msra.mxu0 %v2339_v0 }
 0x652   : > { %v2345_v38 = vpack.c.bf16 %v1775_v32, %v1772_v22  ;;  %v2343_v26 = vpack.c.bf16 %v1776_v24, %v1773_v23  ;;  %v2347_v47 = vpack.c.bf16 %v1777_v10, %v1774_v17  ;;  %v2119_v59 = vpop.permute.xlu1 %2118 }
 0x653   : > { %v2124_v60 = vpop.permute.xlu0 %2123 }
 0x654   : > { %2246 = vmatmul.mubr.msk.f32.vlgmr.msra.gmra.mrb[10].mxu1 %vm872_vm1, %v1796_v61  ;;  %2314 = vmatmul.mubr.msk.f32.vlgmr.msra.gmra.mrb[14].mxu0 %vm872_vm1, %v1797_v14 }
 0x655   : > { %2344 = vmatprep.subr.bf16.mxu1 %v2343_v26  ;;  %2348 = vmatprep.subr.bf16.mxu0 %v2347_v47 }
 0x656   : > { %2346 = vmatpush1.bf16.msra.mxu1 %v2345_v38  ;;  %2350 = vmatpush3.bf16.msra.mxu0 %v2347_v47 }
 0x657   : > { %1874 = vmatprep.mubr.f32.mxu1 %v2461_v40  ;;  %2320 = vmatprep.mubr.msk.f32.mxu0 %vm872_vm1, %v1794_v43 }
 0x658   : > { %2247 = vmatmul.mubr.msk.f32.gmra.mrb[12].mxu1 %vm872_vm1, %v1797_v14 }
 0x659   : > { %2026 = vmatprep.mubr.f32.mxu1 %v2461_v40 }
 0x65c   : > { %2250 = vmatmul.mubr.msk.f32.vlgmr.msra.gmra.mrb[10].mxu1 %vm872_vm1, %v1794_v43  ;;  %2321 = vmatmul.mubr.msk.f32.vlgmr.msra.gmra.mrb[14].mxu0 %vm872_vm1, %v1795_v48 }
 0x65d   : > { %2032 = vmatprep.mubr.f32.mxu1 %v2461_v40 }
 0x660   : > { %2251 = vmatmul.mubr.msk.f32.gmra.mrb[12].mxu1 %vm872_vm1, %v1795_v48 }
 0x72f   : > { %v2028_v25 = vpop.f32.mrb[10].mxu1  ;;  %v2322_v27 = vpop.f32.mrb[14].mxu0 }
 0x730   : > { %v2126_v28 = vadd.f32 %v2119_v59, %v2028_v25  ;;  %v2131_v29 = vadd.f32 %v2322_v27, %v2124_v60  ;;  %v2030_v30 = vpop.f32.mrb[11].mxu1  ;;  %v2105_v33 = vpop.f32.mrb[15].mxu0 }
 0x731   : > { %v2127_v40 = vadd.f32 %v2119_v59, %v2030_v30  ;;  %v2128_v36 = vadd.f32 %v2119_v59, %v2105_v33 }
 0x732   : > { %v2138_v37 = vadd.f32 %v2132_v21, %v2126_v28  ;;  %v2143_v39 = vadd.f32 %v2137_v34, %v2131_v29 }
 0x733   : > { %v2139_v55 = vadd.f32 %v2133_v31, %v2127_v40  ;;  %v2140_v41 = vadd.f32 %v2134_v35, %v2128_v36  ;;  %v2034_v42 = vpop.f32.mrb[12].mxu1 }
 0x734   : > { %2144 = vst [vmem:[%s535_s19] sm:$0xff] %v2138_v37  ;;  %2149 = vst [vmem:[%s535_s19 + $0x28] sm:$0xff] %v2143_v39  ;;  %v2129_v45 = vadd.f32 %v2124_v60, %v2034_v42  ;;  %v2036_v46 = vpop.f32.mrb[13].mxu1 }
 0x735   : > { %2145 = vst [vmem:[%s535_s19 + $0x8] sm:$0xff] %v2139_v55  ;;  %2146 = vst [vmem:[%s535_s19 + $0x10] sm:$0xff] %v2140_v41  ;;  %v2130_v51 = vadd.f32 %v2124_v60, %v2036_v46 }
 0x736   : > { %v2141_v52 = vadd.f32 %v2135_v44, %v2129_v45 }
 0x737   : > { %v2142_v53 = vadd.f32 %v2136_v49, %v2130_v51 }
 0x738   : > { %2147 = vst [vmem:[%s535_s19 + $0x18] sm:$0xff] %v2141_v52 }
 0x739   : > { %2148 = vst [vmem:[%s535_s19 + $0x20] sm:$0xff] %v2142_v53 }
 0x73a PF: > { %s27_s21 = sadd.s32 1, %s2447_s21  }
 0x73b   : > { %p24_p1 = scmp.ge.s32.totalorder %s27_s21, 4  }
 0x73d   :  { %26 = sbr.rel (!%p24_p1) target bundleno = 3 (0x3), region = 119 }
 0x744   :  { %2171 = vsyncpa [#allocation5], 1 }
 0x745   :  { %2173 = vsyncpa [#allocation5 + $0x1], 1 }

</bundles_post_ra>
